<compile_context>
chip_gen: v7x
topology: tpu7x:2x2x1
jax: 0.10.0
libtpu: 0.0.40
codegen_flags: <defaults>
</compile_context>

<pallas_src>
import functools

import jax
import jax.numpy as jnp
from jax.experimental import pallas as pl
from jax.experimental.pallas import tpu as pltpu


def _round_up(x, m):
    return (x + m - 1) // m * m


def _cpad(c):
    return max(128, _round_up(c, 128))


# ----------------------------------------------------------------------------
# Tiled MXU matmul + fused bias/activation epilogue (optionally + BN statistics)
# ----------------------------------------------------------------------------
def _mm_kernel(a_ref, b_ref, bias_ref, o_ref, acc_ref, *, act):
    @pl.when(pl.program_id(2) == 0)
    def _():
        acc_ref[...] = jnp.zeros_like(acc_ref)

    acc_ref[...] += jnp.dot(a_ref[...], b_ref[...],
                            preferred_element_type=jnp.float32)

    @pl.when(pl.program_id(2) == pl.num_programs(2) - 1)
    def _():
        y = acc_ref[...] + bias_ref[...]
        if act == "leaky_relu":
            y = jnp.where(y >= 0.0, y, 0.2 * y)
        o_ref[...] = y.astype(o_ref.dtype)


def _mm_kernel_stats(a_ref, b_ref, bias_ref, o_ref, sum_ref, sq_ref, acc_ref, *, act):
    @pl.when(pl.program_id(2) == 0)
    def _():
        acc_ref[...] = jnp.zeros_like(acc_ref)

    acc_ref[...] += jnp.dot(a_ref[...], b_ref[...],
                            preferred_element_type=jnp.float32)

    @pl.when(pl.program_id(2) == pl.num_programs(2) - 1)
    def _():
        y = acc_ref[...] + bias_ref[...]
        if act == "leaky_relu":
            y = jnp.where(y >= 0.0, y, 0.2 * y)
        o_ref[...] = y.astype(o_ref.dtype)
        # Per-(M-tile) column statistics for the following BatchNorm.  Padded M
        # rows are zero and bias==0 for BN layers, so they contribute nothing.
        sum_ref[...] = jnp.sum(y, axis=0, keepdims=True)[None]          # (1,1,tn)
        sq_ref[...] = jnp.sum(y * y, axis=0, keepdims=True)[None]       # (1,1,tn)


def matmul_bias_act(a, w_mat, bias, act=None, with_stats=False):
    """(M, K) @ (K, N) + bias, optional fused LeakyReLU, optional BN statistics.

    K and N must be multiples of 128 (padded by the caller).
    Returns (out (M, N) bf16, col_sum (N,) f32 | None, col_sumsq (N,) f32 | None).
    """
    M, K = a.shape
    K2, N = w_mat.shape
    assert K == K2 and K % 128 == 0 and N % 128 == 0

    # tn = full N (when small) so the 16x-amplified A slab streams from HBM once.
    if N <= 512:
        tn = N
    elif N % 512 == 0:
        tn = 512
    elif N % 256 == 0:
        tn = 256
    else:
        tn = 128

    # tm: keep >= 2 M-tiles when M allows so v7x megacore has a parallel axis;
    # multiples of 16 so bf16 output blocks are sublane-packed.
    if M >= 512:
        tm = 256
    elif M >= 32:
        tm = _round_up((M + 1) // 2, 16)
    else:
        tm = _round_up(max(M, 16), 16)
    Mp = _round_up(M, tm)

    # tk: biggest candidate dividing K; with bf16 operands the double-buffered
    # A/B tiles stay well under a few MiB (safe on v7x's 64 MiB VMEM too).
    tk = 128
    for cand in (2048, 1024, 512, 256):
        if K % cand == 0:
            tk = cand
            break

    nm, nn, nk = Mp // tm, N // tn, K // tk

    a_p = a if Mp == M else jnp.pad(a, ((0, Mp - M), (0, 0)))
    a_bf = a_p.astype(jnp.bfloat16)
    w_bf = w_mat.astype(jnp.bfloat16)
    bias2 = bias.reshape(1, N).astype(jnp.float32)

    common = dict(
        grid=(nm, nn, nk),
        in_specs=[
            pl.BlockSpec((tm, tk), lambda i, j, k: (i, k)),
            pl.BlockSpec((tk, tn), lambda i, j, k: (k, j)),
            pl.BlockSpec((1, tn), lambda i, j, k: (0, j)),
        ],
        scratch_shapes=[pltpu.VMEM((tm, tn), jnp.float32)],
        compiler_params=pltpu.CompilerParams(
            dimension_semantics=("parallel", "parallel", "arbitrary"),
            vmem_limit_bytes=48 * 1024 * 1024),
        cost_estimate=pl.CostEstimate(
            flops=2 * Mp * K * N,
            transcendentals=0,
            bytes_accessed=Mp * K * 2 + K * N * 2 + Mp * N * 2),
    )

    if with_stats:
        out, col_sum, col_sq = pl.pallas_call(
            functools.partial(_mm_kernel_stats, act=act),
            out_shape=(
                jax.ShapeDtypeStruct((Mp, N), jnp.bfloat16),
                jax.ShapeDtypeStruct((nm, 1, N), jnp.float32),
                jax.ShapeDtypeStruct((nm, 1, N), jnp.float32),
            ),
            out_specs=(
                pl.BlockSpec((tm, tn), lambda i, j, k: (i, j)),
                pl.BlockSpec((1, 1, tn), lambda i, j, k: (i, 0, j)),
                pl.BlockSpec((1, 1, tn), lambda i, j, k: (i, 0, j)),
            ),
            **common,
        )(a_bf, w_bf, bias2)
        col_sum = col_sum.reshape(nm, N).sum(axis=0)
        col_sq = col_sq.reshape(nm, N).sum(axis=0)
    else:
        out = pl.pallas_call(
            functools.partial(_mm_kernel, act=act),
            out_shape=jax.ShapeDtypeStruct((Mp, N), jnp.bfloat16),
            out_specs=pl.BlockSpec((tm, tn), lambda i, j, k: (i, j)),
            **common,
        )(a_bf, w_bf, bias2)
        col_sum = col_sq = None

    if Mp != M:
        out = out[:M]
    return out, col_sum, col_sq


# ----------------------------------------------------------------------------
# Conv2d(k=4, p=1, stride 1 or 2) = im2col (JAX glue, bf16) + Pallas matmul
# ----------------------------------------------------------------------------
def conv2d(x, w_mat, bias, stride, act=None, with_stats=False):
    """x: NHWC bf16 with REAL channel count; w_mat: (round_up(16*Cin,128), Cout_pad)."""
    N, H, W, Cin = x.shape
    Kp, Np = w_mat.shape
    K = 16 * Cin
    assert _round_up(K, 128) == Kp
    if stride == 2:
        Ho, Wo = H // 2, W // 2
    else:
        Ho, Wo = H - 1, W - 1

    xp = jnp.pad(x, ((0, 0), (1, 1), (1, 1), (0, 0)))
    cols = []
    for ky in range(4):
        for kx in range(4):
            if stride == 2:
                cols.append(xp[:, ky:ky + 2 * Ho:2, kx:kx + 2 * Wo:2, :])
            else:
                cols.append(xp[:, ky:ky + Ho, kx:kx + Wo, :])
    if Kp != K:
        cols.append(jnp.zeros((N, Ho, Wo, Kp - K), x.dtype))      # pad K once
    A = jnp.concatenate(cols, axis=-1).reshape(N * Ho * Wo, Kp)

    out, s, sq = matmul_bias_act(A, w_mat, bias, act=act, with_stats=with_stats)
    return out.reshape(N, Ho, Wo, Np), s, sq


# ----------------------------------------------------------------------------
# Discriminator parameters + forward (mirrors the PyTorch module exactly)
# ----------------------------------------------------------------------------
def _pack_conv(key, cin, cout, use_bias, std=0.02):
    """Tightly packed (round_up(16*cin,128), cout_pad) bf16 weight matrix + f32 bias."""
    cout_p = _cpad(cout)
    K = 16 * cin
    Kp = _round_up(K, 128)
    kw_, kb_ = jax.random.split(key)
    w = std * jax.random.normal(kw_, (cout, cin, 4, 4), jnp.float32)
    # rows ordered (ky, kx, cin) to match im2col column order; pad K and Cout once
    w_mat = jnp.transpose(w, (2, 3, 1, 0)).reshape(K, cout)
    w_mat = jnp.pad(w_mat, ((0, Kp - K), (0, cout_p - cout))).astype(jnp.bfloat16)
    bias = jnp.zeros((cout_p,), jnp.float32)
    if use_bias:
        b = std * jax.random.normal(kb_, (cout,), jnp.float32)
        bias = bias.at[:cout].set(b)
    return w_mat, bias


def _bn_params(key, c):
    kg, kb = jax.random.split(key)
    gamma = 1.0 + 0.02 * jax.random.normal(kg, (c,), jnp.float32)
    beta = 0.02 * jax.random.normal(kb, (c,), jnp.float32)
    return gamma, beta


def init_discriminator(key, input_nc, ndf=64, n_layers=3):
    # norm_layer = BatchNorm2d -> use_bias = False for the BN-normalized convs.
    keys = jax.random.split(key, 2 * (n_layers + 2))
    layers = []
    # Conv(input_nc -> ndf, s2, bias=True) + LeakyReLU(0.2)
    w, b = _pack_conv(keys[0], input_nc, ndf, use_bias=True)
    layers.append(dict(w=w, b=b, stride=2, cout=ndf, bn=None, act="leaky_relu"))
    nf_mult = 1
    n = 1
    for n in range(1, n_layers):
        nf_mult_prev = nf_mult
        nf_mult = min(2 ** n, 8)
        w, b = _pack_conv(keys[2 * n], ndf * nf_mult_prev, ndf * nf_mult, use_bias=False)
        g, bt = _bn_params(keys[2 * n + 1], ndf * nf_mult)
        layers.append(dict(w=w, b=b, stride=2, cout=ndf * nf_mult,
                           bn=(g, bt), act="leaky_relu"))
    # NOTE: the reference code reuses the loop variable `n` here (not n_layers),
    # so for n_layers=3 this is a (ndf*4 -> ndf*4) stride-1 conv.
    nf_mult_prev = nf_mult
    nf_mult = min(2 ** n, 8)
    w, b = _pack_conv(keys[2 * n_layers], ndf * nf_mult_prev, ndf * nf_mult, use_bias=False)
    g, bt = _bn_params(keys[2 * n_layers + 1], ndf * nf_mult)
    layers.append(dict(w=w, b=b, stride=1, cout=ndf * nf_mult,
                       bn=(g, bt), act="leaky_relu"))
    # Final Conv(ndf*nf_mult -> 1, s1, bias=True), no norm/activation
    w, b = _pack_conv(keys[2 * n_layers + 2], ndf * nf_mult, 1, use_bias=True)
    layers.append(dict(w=w, b=b, stride=1, cout=1, bn=None, act=None))
    return layers


def discriminator_forward(layers, x_nchw):
    # NCHW -> NHWC, bf16, real channel count (K is packed tightly per layer).
    x = jnp.transpose(x_nchw, (0, 2, 3, 1)).astype(jnp.bfloat16)
    pending = None   # (scale, shift) of a BatchNorm+LeakyReLU folded into next im2col
    for layer in layers:
        if pending is not None:
            scale, shift = pending
            xf = x.astype(jnp.float32) * scale + shift
            xf = jnp.where(xf >= 0.0, xf, 0.2 * xf)
            x = xf.astype(jnp.bfloat16)          # fused by XLA with the im2col below
            pending = None
        use_bn = layer["bn"] is not None
        y, s, sq = conv2d(x, layer["w"], layer["b"], layer["stride"],
                          act=None if use_bn else layer["act"],
                          with_stats=use_bn)
        cout = layer["cout"]
        y = y[..., :cout]                        # drop lane padding (lazy slice)
        if use_bn:
            gamma, beta = layer["bn"]
            count = y.shape[0] * y.shape[1] * y.shape[2]
            mean = s[:cout] / count
            var = jnp.maximum(sq[:cout] / count - mean * mean, 0.0)
            scale = gamma * jax.lax.rsqrt(var + 1e-5)
            shift = beta - mean * scale
            pending = (scale, shift)             # applied at the next layer's im2col
        x = y
    # last layer has bn=None -> nothing pending
    return jnp.transpose(x, (0, 3, 1, 2)).astype(jnp.float32)     # NHWC -> NCHW


# ----------------------------------------------------------------------------
if __name__ == "__main__":
    # Small but structurally consistent: spatial 32 -> 16 -> 8 -> 4 -> 3 -> 2.
    input_nc, ndf, n_layers = 3, 16, 3
    batch, H, W = 2, 32, 32

    root = jax.random.PRNGKey(0)
    k_param, k_x = jax.random.split(root)
    params = init_discriminator(k_param, input_nc, ndf, n_layers)
    x = jax.random.normal(k_x, (batch, input_nc, H, W), jnp.float32)

    fwd = jax.jit(lambda inp: discriminator_forward(params, inp))
    out = fwd(x)
    out = jax.block_until_ready(out)

    assert out.shape == (batch, 1, 2, 2), out.shape
    assert bool(jnp.all(jnp.isfinite(out)))
    print("KERNEL_OK")
</pallas_src>

<mosaic_0001>
module attributes {stable_mosaic.version = 11 : i64} {
  func.func @_mm_kernel(%arg0: i32, %arg1: i32, %arg2: i32, %arg3: memref<256x128xbf16, #tpu.memory_space<vmem>>, %arg4: memref<128x128xbf16, #tpu.memory_space<vmem>>, %arg5: memref<1x128xf32, #tpu.memory_space<vmem>>, %arg6: memref<256x128xbf16, #tpu.memory_space<vmem>>, %arg7: memref<256x128xf32, #tpu.memory_space<vmem>>) attributes {dimension_semantics = [#tpu.dimension_semantics<parallel>, #tpu.dimension_semantics<parallel>, #tpu.dimension_semantics<arbitrary>], iteration_bounds = array<i64: 2, 1, 1>, scalar_prefetch = 0 : i64, scratch_operands = 1 : i64, tpu.core_type = #tpu.core_type<tc>, window_params = [{transform_indices = @transform_0, window_bounds = array<i64: 256, 128>}, {transform_indices = @transform_1, window_bounds = array<i64: 128, 128>}, {transform_indices = @transform_2, window_bounds = array<i64: 1, 128>}, {transform_indices = @transform_3, window_bounds = array<i64: 256, 128>}]} {
    %c0_i32 = arith.constant 0 : i32
    %0 = arith.cmpi eq, %arg2, %c0_i32 : i32
    %1 = arith.extui %0 : i1 to i32
    %c0_i32_0 = arith.constant 0 : i32
    %2 = arith.cmpi ne, %1, %c0_i32_0 : i32
    scf.if %2 {
      %cst_10 = arith.constant 0.000000e+00 : f32
      %12 = vector.broadcast %cst_10 : f32 to vector<256x128xf32>
      %c0_11 = arith.constant 0 : index
      %c0_12 = arith.constant 0 : index
      %13 = vector.load %arg7[%c0_11, %c0_12] : memref<256x128xf32, #tpu.memory_space<vmem>>, vector<256x128xf32>
      tpu.vector_store %arg7[%c0_11, %c0_12], %12 {strides = array<i32>} : memref<256x128xf32, #tpu.memory_space<vmem>>, vector<256x128xf32>,
    } else {
    }
    %c0 = arith.constant 0 : index
    %c0_1 = arith.constant 0 : index
    %3 = vector.load %arg7[%c0, %c0_1] : memref<256x128xf32, #tpu.memory_space<vmem>>, vector<256x128xf32>
    %c0_2 = arith.constant 0 : index
    %c0_3 = arith.constant 0 : index
    %4 = vector.load %arg3[%c0_2, %c0_3] : memref<256x128xbf16, #tpu.memory_space<vmem>>, vector<256x128xbf16>
    %c0_4 = arith.constant 0 : index
    %c0_5 = arith.constant 0 : index
    %5 = vector.load %arg4[%c0_4, %c0_5] : memref<128x128xbf16, #tpu.memory_space<vmem>>, vector<128x128xbf16>
    %cst = arith.constant dense<0.000000e+00> : vector<256x128xf32>
    %6 = tpu.matmul %4, %5, %cst {dimension_numbers = #tpu.dot_dimension_numbers<[1], [0], [0], [1], [0, 0, 1, 1], [], []>} : vector<256x128xbf16>, vector<128x128xbf16>, vector<256x128xf32> -> vector<256x128xf32>
    %7 = arith.addf %3, %6 : vector<256x128xf32>
    %c0_6 = arith.constant 0 : index
    %c0_7 = arith.constant 0 : index
    %8 = vector.load %arg7[%c0_6, %c0_7] : memref<256x128xf32, #tpu.memory_space<vmem>>, vector<256x128xf32>
    tpu.vector_store %arg7[%c0_6, %c0_7], %7 {strides = array<i32>} : memref<256x128xf32, #tpu.memory_space<vmem>>, vector<256x128xf32>,
    %c0_i32_8 = arith.constant 0 : i32
    %9 = arith.cmpi eq, %arg2, %c0_i32_8 : i32
    %10 = arith.extui %9 : i1 to i32
    %c0_i32_9 = arith.constant 0 : i32
    %11 = arith.cmpi ne, %10, %c0_i32_9 : i32
    scf.if %11 {
      %c0_10 = arith.constant 0 : index
      %c0_11 = arith.constant 0 : index
      %12 = vector.load %arg7[%c0_10, %c0_11] : memref<256x128xf32, #tpu.memory_space<vmem>>, vector<256x128xf32>
      %c0_12 = arith.constant 0 : index
      %c0_13 = arith.constant 0 : index
      %13 = vector.load %arg5[%c0_12, %c0_13] : memref<1x128xf32, #tpu.memory_space<vmem>>, vector<1x128xf32>
      %14 = vector.broadcast %13 : vector<1x128xf32> to vector<256x128xf32>
      %15 = arith.addf %12, %14 : vector<256x128xf32>
      %cst_14 = arith.constant 0.000000e+00 : f32
      %16 = vector.broadcast %cst_14 : f32 to vector<256x128xf32>
      %17 = arith.cmpf oge, %15, %16 : vector<256x128xf32>
      %cst_15 = arith.constant 2.000000e-01 : f32
      %18 = vector.broadcast %cst_15 : f32 to vector<256x128xf32>
      %19 = arith.mulf %18, %15 : vector<256x128xf32>
      %20 = arith.select %17, %15, %19 : vector<256x128xi1>, vector<256x128xf32>
      %21 = arith.truncf %20 : vector<256x128xf32> to vector<256x128xbf16>
      %c0_16 = arith.constant 0 : index
      %c0_17 = arith.constant 0 : index
      %22 = vector.load %arg6[%c0_16, %c0_17] : memref<256x128xbf16, #tpu.memory_space<vmem>>, vector<256x128xbf16>
      tpu.vector_store %arg6[%c0_16, %c0_17], %21 {strides = array<i32>} : memref<256x128xbf16, #tpu.memory_space<vmem>>, vector<256x128xbf16>,
    } else {
    }
    return
  }
  func.func @transform_0(%arg0: i32, %arg1: i32, %arg2: i32) -> (i32, i32) {
    %c0_i32 = arith.constant 0 : i32
    return %arg0, %arg2 : i32, i32
  }
  func.func @transform_1(%arg0: i32, %arg1: i32, %arg2: i32) -> (i32, i32) {
    %c0_i32 = arith.constant 0 : i32
    return %arg2, %arg1 : i32, i32
  }
  func.func @transform_2(%arg0: i32, %arg1: i32, %arg2: i32) -> (i32, i32) {
    %c0_i32 = arith.constant 0 : i32
    %c0_i32_0 = arith.constant 0 : i32
    return %c0_i32, %arg1 : i32, i32
  }
  func.func @transform_3(%arg0: i32, %arg1: i32, %arg2: i32) -> (i32, i32) {
    %c0_i32 = arith.constant 0 : i32
    return %arg0, %arg1 : i32, i32
  }
}

module attributes {stable_mosaic.version = 11 : i64} {
  func.func @_mm_kernel_stats(%arg0: i32, %arg1: i32, %arg2: i32, %arg3: memref<64x256xbf16, #tpu.memory_space<vmem>>, %arg4: memref<256x128xbf16, #tpu.memory_space<vmem>>, %arg5: memref<1x128xf32, #tpu.memory_space<vmem>>, %arg6: memref<64x128xbf16, #tpu.memory_space<vmem>>, %arg7: memref<1x1x128xf32, #tpu.memory_space<vmem>>, %arg8: memref<1x1x128xf32, #tpu.memory_space<vmem>>, %arg9: memref<64x128xf32, #tpu.memory_space<vmem>>) attributes {dimension_semantics = [#tpu.dimension_semantics<parallel>, #tpu.dimension_semantics<parallel>, #tpu.dimension_semantics<arbitrary>], iteration_bounds = array<i64: 2, 1, 1>, scalar_prefetch = 0 : i64, scratch_operands = 1 : i64, tpu.core_type = #tpu.core_type<tc>, window_params = [{transform_indices = @transform_0, window_bounds = array<i64: 64, 256>}, {transform_indices = @transform_1, window_bounds = array<i64: 256, 128>}, {transform_indices = @transform_2, window_bounds = array<i64: 1, 128>}, {transform_indices = @transform_3, window_bounds = array<i64: 64, 128>}, {transform_indices = @transform_4, window_bounds = array<i64: 1, 1, 128>}, {transform_indices = @transform_5, window_bounds = array<i64: 1, 1, 128>}]} {
    %c0_i32 = arith.constant 0 : i32
    %0 = arith.cmpi eq, %arg2, %c0_i32 : i32
    %1 = arith.extui %0 : i1 to i32
    %c0_i32_0 = arith.constant 0 : i32
    %2 = arith.cmpi ne, %1, %c0_i32_0 : i32
    scf.if %2 {
      %cst_10 = arith.constant 0.000000e+00 : f32
      %12 = vector.broadcast %cst_10 : f32 to vector<64x128xf32>
      %c0_11 = arith.constant 0 : index
      %c0_12 = arith.constant 0 : index
      %13 = vector.load %arg9[%c0_11, %c0_12] : memref<64x128xf32, #tpu.memory_space<vmem>>, vector<64x128xf32>
      tpu.vector_store %arg9[%c0_11, %c0_12], %12 {strides = array<i32>} : memref<64x128xf32, #tpu.memory_space<vmem>>, vector<64x128xf32>,
    } else {
    }
    %c0 = arith.constant 0 : index
    %c0_1 = arith.constant 0 : index
    %3 = vector.load %arg9[%c0, %c0_1] : memref<64x128xf32, #tpu.memory_space<vmem>>, vector<64x128xf32>
    %c0_2 = arith.constant 0 : index
    %c0_3 = arith.constant 0 : index
    %4 = vector.load %arg3[%c0_2, %c0_3] : memref<64x256xbf16, #tpu.memory_space<vmem>>, vector<64x256xbf16>
    %c0_4 = arith.constant 0 : index
    %c0_5 = arith.constant 0 : index
    %5 = vector.load %arg4[%c0_4, %c0_5] : memref<256x128xbf16, #tpu.memory_space<vmem>>, vector<256x128xbf16>
    %cst = arith.constant dense<0.000000e+00> : vector<64x128xf32>
    %6 = tpu.matmul %4, %5, %cst {dimension_numbers = #tpu.dot_dimension_numbers<[1], [0], [0], [1], [0, 0, 1, 1], [], []>} : vector<64x256xbf16>, vector<256x128xbf16>, vector<64x128xf32> -> vector<64x128xf32>
    %7 = arith.addf %3, %6 : vector<64x128xf32>
    %c0_6 = arith.constant 0 : index
    %c0_7 = arith.constant 0 : index
    %8 = vector.load %arg9[%c0_6, %c0_7] : memref<64x128xf32, #tpu.memory_space<vmem>>, vector<64x128xf32>
    tpu.vector_store %arg9[%c0_6, %c0_7], %7 {strides = array<i32>} : memref<64x128xf32, #tpu.memory_space<vmem>>, vector<64x128xf32>,
    %c0_i32_8 = arith.constant 0 : i32
    %9 = arith.cmpi eq, %arg2, %c0_i32_8 : i32
    %10 = arith.extui %9 : i1 to i32
    %c0_i32_9 = arith.constant 0 : i32
    %11 = arith.cmpi ne, %10, %c0_i32_9 : i32
    scf.if %11 {
      %c0_10 = arith.constant 0 : index
      %c0_11 = arith.constant 0 : index
      %12 = vector.load %arg9[%c0_10, %c0_11] : memref<64x128xf32, #tpu.memory_space<vmem>>, vector<64x128xf32>
      %c0_12 = arith.constant 0 : index
      %c0_13 = arith.constant 0 : index
      %13 = vector.load %arg5[%c0_12, %c0_13] : memref<1x128xf32, #tpu.memory_space<vmem>>, vector<1x128xf32>
      %14 = vector.broadcast %13 : vector<1x128xf32> to vector<64x128xf32>
      %15 = arith.addf %12, %14 : vector<64x128xf32>
      %16 = arith.truncf %15 : vector<64x128xf32> to vector<64x128xbf16>
      %c0_14 = arith.constant 0 : index
      %c0_15 = arith.constant 0 : index
      %17 = vector.load %arg6[%c0_14, %c0_15] : memref<64x128xbf16, #tpu.memory_space<vmem>>, vector<64x128xbf16>
      tpu.vector_store %arg6[%c0_14, %c0_15], %16 {strides = array<i32>} : memref<64x128xbf16, #tpu.memory_space<vmem>>, vector<64x128xbf16>,
      %cst_16 = arith.constant dense<0.000000e+00> : vector<128xf32>
      %18 = vector.multi_reduction <add>, %15, %cst_16 [0] : vector<64x128xf32> to vector<128xf32>
      %19 = vector.shape_cast %18 : vector<128xf32> to vector<1x128xf32>
      %20 = vector.shape_cast %19 : vector<1x128xf32> to vector<1x1x128xf32>
      %c0_17 = arith.constant 0 : index
      %c0_18 = arith.constant 0 : index
      %c0_19 = arith.constant 0 : index
      %21 = vector.load %arg7[%c0_17, %c0_18, %c0_19] : memref<1x1x128xf32, #tpu.memory_space<vmem>>, vector<1x1x128xf32>
      tpu.vector_store %arg7[%c0_17, %c0_18, %c0_19], %20 {strides = array<i32>} : memref<1x1x128xf32, #tpu.memory_space<vmem>>, vector<1x1x128xf32>,
      %22 = arith.mulf %15, %15 : vector<64x128xf32>
      %cst_20 = arith.constant dense<0.000000e+00> : vector<128xf32>
      %23 = vector.multi_reduction <add>, %22, %cst_20 [0] : vector<64x128xf32> to vector<128xf32>
      %24 = vector.shape_cast %23 : vector<128xf32> to vector<1x128xf32>
      %25 = vector.shape_cast %24 : vector<1x128xf32> to vector<1x1x128xf32>
      %c0_21 = arith.constant 0 : index
      %c0_22 = arith.constant 0 : index
      %c0_23 = arith.constant 0 : index
      %26 = vector.load %arg8[%c0_21, %c0_22, %c0_23] : memref<1x1x128xf32, #tpu.memory_space<vmem>>, vector<1x1x128xf32>
      tpu.vector_store %arg8[%c0_21, %c0_22, %c0_23], %25 {strides = array<i32>} : memref<1x1x128xf32, #tpu.memory_space<vmem>>, vector<1x1x128xf32>,
    } else {
    }
    return
  }
  func.func @transform_0(%arg0: i32, %arg1: i32, %arg2: i32) -> (i32, i32) {
    %c0_i32 = arith.constant 0 : i32
    return %arg0, %arg2 : i32, i32
  }
  func.func @transform_1(%arg0: i32, %arg1: i32, %arg2: i32) -> (i32, i32) {
    %c0_i32 = arith.constant 0 : i32
    return %arg2, %arg1 : i32, i32
  }
  func.func @transform_2(%arg0: i32, %arg1: i32, %arg2: i32) -> (i32, i32) {
    %c0_i32 = arith.constant 0 : i32
    %c0_i32_0 = arith.constant 0 : i32
    return %c0_i32, %arg1 : i32, i32
  }
  func.func @transform_3(%arg0: i32, %arg1: i32, %arg2: i32) -> (i32, i32) {
    %c0_i32 = arith.constant 0 : i32
    return %arg0, %arg1 : i32, i32
  }
  func.func @transform_4(%arg0: i32, %arg1: i32, %arg2: i32) -> (i32, i32, i32) {
    %c0_i32 = arith.constant 0 : i32
    %c0_i32_0 = arith.constant 0 : i32
    return %arg0, %c0_i32, %arg1 : i32, i32, i32
  }
  func.func @transform_5(%arg0: i32, %arg1: i32, %arg2: i32) -> (i32, i32, i32) {
    %c0_i32 = arith.constant 0 : i32
    %c0_i32_0 = arith.constant 0 : i32
    return %arg0, %c0_i32, %arg1 : i32, i32, i32
  }
}

module attributes {stable_mosaic.version = 11 : i64} {
  func.func @_mm_kernel_stats(%arg0: i32, %arg1: i32, %arg2: i32, %arg3: memref<16x512xbf16, #tpu.memory_space<vmem>>, %arg4: memref<512x128xbf16, #tpu.memory_space<vmem>>, %arg5: memref<1x128xf32, #tpu.memory_space<vmem>>, %arg6: memref<16x128xbf16, #tpu.memory_space<vmem>>, %arg7: memref<1x1x128xf32, #tpu.memory_space<vmem>>, %arg8: memref<1x1x128xf32, #tpu.memory_space<vmem>>, %arg9: memref<16x128xf32, #tpu.memory_space<vmem>>) attributes {dimension_semantics = [#tpu.dimension_semantics<parallel>, #tpu.dimension_semantics<parallel>, #tpu.dimension_semantics<arbitrary>], iteration_bounds = array<i64: 2, 1, 1>, scalar_prefetch = 0 : i64, scratch_operands = 1 : i64, tpu.core_type = #tpu.core_type<tc>, window_params = [{transform_indices = @transform_0, window_bounds = array<i64: 16, 512>}, {transform_indices = @transform_1, window_bounds = array<i64: 512, 128>}, {transform_indices = @transform_2, window_bounds = array<i64: 1, 128>}, {transform_indices = @transform_3, window_bounds = array<i64: 16, 128>}, {transform_indices = @transform_4, window_bounds = array<i64: 1, 1, 128>}, {transform_indices = @transform_5, window_bounds = array<i64: 1, 1, 128>}]} {
    %c0_i32 = arith.constant 0 : i32
    %0 = arith.cmpi eq, %arg2, %c0_i32 : i32
    %1 = arith.extui %0 : i1 to i32
    %c0_i32_0 = arith.constant 0 : i32
    %2 = arith.cmpi ne, %1, %c0_i32_0 : i32
    scf.if %2 {
      %cst_10 = arith.constant 0.000000e+00 : f32
      %12 = vector.broadcast %cst_10 : f32 to vector<16x128xf32>
      %c0_11 = arith.constant 0 : index
      %c0_12 = arith.constant 0 : index
      %13 = vector.load %arg9[%c0_11, %c0_12] : memref<16x128xf32, #tpu.memory_space<vmem>>, vector<16x128xf32>
      tpu.vector_store %arg9[%c0_11, %c0_12], %12 {strides = array<i32>} : memref<16x128xf32, #tpu.memory_space<vmem>>, vector<16x128xf32>,
    } else {
    }
    %c0 = arith.constant 0 : index
    %c0_1 = arith.constant 0 : index
    %3 = vector.load %arg9[%c0, %c0_1] : memref<16x128xf32, #tpu.memory_space<vmem>>, vector<16x128xf32>
    %c0_2 = arith.constant 0 : index
    %c0_3 = arith.constant 0 : index
    %4 = vector.load %arg3[%c0_2, %c0_3] : memref<16x512xbf16, #tpu.memory_space<vmem>>, vector<16x512xbf16>
    %c0_4 = arith.constant 0 : index
    %c0_5 = arith.constant 0 : index
    %5 = vector.load %arg4[%c0_4, %c0_5] : memref<512x128xbf16, #tpu.memory_space<vmem>>, vector<512x128xbf16>
    %cst = arith.constant dense<0.000000e+00> : vector<16x128xf32>
    %6 = tpu.matmul %4, %5, %cst {dimension_numbers = #tpu.dot_dimension_numbers<[1], [0], [0], [1], [0, 0, 1, 1], [], []>} : vector<16x512xbf16>, vector<512x128xbf16>, vector<16x128xf32> -> vector<16x128xf32>
    %7 = arith.addf %3, %6 : vector<16x128xf32>
    %c0_6 = arith.constant 0 : index
    %c0_7 = arith.constant 0 : index
    %8 = vector.load %arg9[%c0_6, %c0_7] : memref<16x128xf32, #tpu.memory_space<vmem>>, vector<16x128xf32>
    tpu.vector_store %arg9[%c0_6, %c0_7], %7 {strides = array<i32>} : memref<16x128xf32, #tpu.memory_space<vmem>>, vector<16x128xf32>,
    %c0_i32_8 = arith.constant 0 : i32
    %9 = arith.cmpi eq, %arg2, %c0_i32_8 : i32
    %10 = arith.extui %9 : i1 to i32
    %c0_i32_9 = arith.constant 0 : i32
    %11 = arith.cmpi ne, %10, %c0_i32_9 : i32
    scf.if %11 {
      %c0_10 = arith.constant 0 : index
      %c0_11 = arith.constant 0 : index
      %12 = vector.load %arg9[%c0_10, %c0_11] : memref<16x128xf32, #tpu.memory_space<vmem>>, vector<16x128xf32>
      %c0_12 = arith.constant 0 : index
      %c0_13 = arith.constant 0 : index
      %13 = vector.load %arg5[%c0_12, %c0_13] : memref<1x128xf32, #tpu.memory_space<vmem>>, vector<1x128xf32>
      %14 = vector.broadcast %13 : vector<1x128xf32> to vector<16x128xf32>
      %15 = arith.addf %12, %14 : vector<16x128xf32>
      %16 = arith.truncf %15 : vector<16x128xf32> to vector<16x128xbf16>
      %c0_14 = arith.constant 0 : index
      %c0_15 = arith.constant 0 : index
      %17 = vector.load %arg6[%c0_14, %c0_15] : memref<16x128xbf16, #tpu.memory_space<vmem>>, vector<16x128xbf16>
      tpu.vector_store %arg6[%c0_14, %c0_15], %16 {strides = array<i32>} : memref<16x128xbf16, #tpu.memory_space<vmem>>, vector<16x128xbf16>,
      %cst_16 = arith.constant dense<0.000000e+00> : vector<128xf32>
      %18 = vector.multi_reduction <add>, %15, %cst_16 [0] : vector<16x128xf32> to vector<128xf32>
      %19 = vector.shape_cast %18 : vector<128xf32> to vector<1x128xf32>
      %20 = vector.shape_cast %19 : vector<1x128xf32> to vector<1x1x128xf32>
      %c0_17 = arith.constant 0 : index
      %c0_18 = arith.constant 0 : index
      %c0_19 = arith.constant 0 : index
      %21 = vector.load %arg7[%c0_17, %c0_18, %c0_19] : memref<1x1x128xf32, #tpu.memory_space<vmem>>, vector<1x1x128xf32>
      tpu.vector_store %arg7[%c0_17, %c0_18, %c0_19], %20 {strides = array<i32>} : memref<1x1x128xf32, #tpu.memory_space<vmem>>, vector<1x1x128xf32>,
      %22 = arith.mulf %15, %15 : vector<16x128xf32>
      %cst_20 = arith.constant dense<0.000000e+00> : vector<128xf32>
      %23 = vector.multi_reduction <add>, %22, %cst_20 [0] : vector<16x128xf32> to vector<128xf32>
      %24 = vector.shape_cast %23 : vector<128xf32> to vector<1x128xf32>
      %25 = vector.shape_cast %24 : vector<1x128xf32> to vector<1x1x128xf32>
      %c0_21 = arith.constant 0 : index
      %c0_22 = arith.constant 0 : index
      %c0_23 = arith.constant 0 : index
      %26 = vector.load %arg8[%c0_21, %c0_22, %c0_23] : memref<1x1x128xf32, #tpu.memory_space<vmem>>, vector<1x1x128xf32>
      tpu.vector_store %arg8[%c0_21, %c0_22, %c0_23], %25 {strides = array<i32>} : memref<1x1x128xf32, #tpu.memory_space<vmem>>, vector<1x1x128xf32>,
    } else {
    }
    return
  }
  func.func @transform_0(%arg0: i32, %arg1: i32, %arg2: i32) -> (i32, i32) {
    %c0_i32 = arith.constant 0 : i32
    return %arg0, %arg2 : i32, i32
  }
  func.func @transform_1(%arg0: i32, %arg1: i32, %arg2: i32) -> (i32, i32) {
    %c0_i32 = arith.constant 0 : i32
    return %arg2, %arg1 : i32, i32
  }
  func.func @transform_2(%arg0: i32, %arg1: i32, %arg2: i32) -> (i32, i32) {
    %c0_i32 = arith.constant 0 : i32
    %c0_i32_0 = arith.constant 0 : i32
    return %c0_i32, %arg1 : i32, i32
  }
  func.func @transform_3(%arg0: i32, %arg1: i32, %arg2: i32) -> (i32, i32) {
    %c0_i32 = arith.constant 0 : i32
    return %arg0, %arg1 : i32, i32
  }
  func.func @transform_4(%arg0: i32, %arg1: i32, %arg2: i32) -> (i32, i32, i32) {
    %c0_i32 = arith.constant 0 : i32
    %c0_i32_0 = arith.constant 0 : i32
    return %arg0, %c0_i32, %arg1 : i32, i32, i32
  }
  func.func @transform_5(%arg0: i32, %arg1: i32, %arg2: i32) -> (i32, i32, i32) {
    %c0_i32 = arith.constant 0 : i32
    %c0_i32_0 = arith.constant 0 : i32
    return %arg0, %c0_i32, %arg1 : i32, i32, i32
  }
}

module attributes {stable_mosaic.version = 11 : i64} {
  func.func @_mm_kernel_stats(%arg0: i32, %arg1: i32, %arg2: i32, %arg3: memref<32x1024xbf16, #tpu.memory_space<vmem>>, %arg4: memref<1024x128xbf16, #tpu.memory_space<vmem>>, %arg5: memref<1x128xf32, #tpu.memory_space<vmem>>, %arg6: memref<32x128xbf16, #tpu.memory_space<vmem>>, %arg7: memref<1x1x128xf32, #tpu.memory_space<vmem>>, %arg8: memref<1x1x128xf32, #tpu.memory_space<vmem>>, %arg9: memref<32x128xf32, #tpu.memory_space<vmem>>) attributes {dimension_semantics = [#tpu.dimension_semantics<parallel>, #tpu.dimension_semantics<parallel>, #tpu.dimension_semantics<arbitrary>], iteration_bounds = array<i64: 1, 1, 1>, scalar_prefetch = 0 : i64, scratch_operands = 1 : i64, tpu.core_type = #tpu.core_type<tc>, window_params = [{transform_indices = @transform_0, window_bounds = array<i64: 32, 1024>}, {transform_indices = @transform_1, window_bounds = array<i64: 1024, 128>}, {transform_indices = @transform_2, window_bounds = array<i64: 1, 128>}, {transform_indices = @transform_3, window_bounds = array<i64: 32, 128>}, {transform_indices = @transform_4, window_bounds = array<i64: 1, 1, 128>}, {transform_indices = @transform_5, window_bounds = array<i64: 1, 1, 128>}]} {
    %c0_i32 = arith.constant 0 : i32
    %0 = arith.cmpi eq, %arg2, %c0_i32 : i32
    %1 = arith.extui %0 : i1 to i32
    %c0_i32_0 = arith.constant 0 : i32
    %2 = arith.cmpi ne, %1, %c0_i32_0 : i32
    scf.if %2 {
      %cst_10 = arith.constant 0.000000e+00 : f32
      %12 = vector.broadcast %cst_10 : f32 to vector<32x128xf32>
      %c0_11 = arith.constant 0 : index
      %c0_12 = arith.constant 0 : index
      %13 = vector.load %arg9[%c0_11, %c0_12] : memref<32x128xf32, #tpu.memory_space<vmem>>, vector<32x128xf32>
      tpu.vector_store %arg9[%c0_11, %c0_12], %12 {strides = array<i32>} : memref<32x128xf32, #tpu.memory_space<vmem>>, vector<32x128xf32>,
    } else {
    }
    %c0 = arith.constant 0 : index
    %c0_1 = arith.constant 0 : index
    %3 = vector.load %arg9[%c0, %c0_1] : memref<32x128xf32, #tpu.memory_space<vmem>>, vector<32x128xf32>
    %c0_2 = arith.constant 0 : index
    %c0_3 = arith.constant 0 : index
    %4 = vector.load %arg3[%c0_2, %c0_3] : memref<32x1024xbf16, #tpu.memory_space<vmem>>, vector<32x1024xbf16>
    %c0_4 = arith.constant 0 : index
    %c0_5 = arith.constant 0 : index
    %5 = vector.load %arg4[%c0_4, %c0_5] : memref<1024x128xbf16, #tpu.memory_space<vmem>>, vector<1024x128xbf16>
    %cst = arith.constant dense<0.000000e+00> : vector<32x128xf32>
    %6 = tpu.matmul %4, %5, %cst {dimension_numbers = #tpu.dot_dimension_numbers<[1], [0], [0], [1], [0, 0, 1, 1], [], []>} : vector<32x1024xbf16>, vector<1024x128xbf16>, vector<32x128xf32> -> vector<32x128xf32>
    %7 = arith.addf %3, %6 : vector<32x128xf32>
    %c0_6 = arith.constant 0 : index
    %c0_7 = arith.constant 0 : index
    %8 = vector.load %arg9[%c0_6, %c0_7] : memref<32x128xf32, #tpu.memory_space<vmem>>, vector<32x128xf32>
    tpu.vector_store %arg9[%c0_6, %c0_7], %7 {strides = array<i32>} : memref<32x128xf32, #tpu.memory_space<vmem>>, vector<32x128xf32>,
    %c0_i32_8 = arith.constant 0 : i32
    %9 = arith.cmpi eq, %arg2, %c0_i32_8 : i32
    %10 = arith.extui %9 : i1 to i32
    %c0_i32_9 = arith.constant 0 : i32
    %11 = arith.cmpi ne, %10, %c0_i32_9 : i32
    scf.if %11 {
      %c0_10 = arith.constant 0 : index
      %c0_11 = arith.constant 0 : index
      %12 = vector.load %arg9[%c0_10, %c0_11] : memref<32x128xf32, #tpu.memory_space<vmem>>, vector<32x128xf32>
      %c0_12 = arith.constant 0 : index
      %c0_13 = arith.constant 0 : index
      %13 = vector.load %arg5[%c0_12, %c0_13] : memref<1x128xf32, #tpu.memory_space<vmem>>, vector<1x128xf32>
      %14 = vector.broadcast %13 : vector<1x128xf32> to vector<32x128xf32>
      %15 = arith.addf %12, %14 : vector<32x128xf32>
      %16 = arith.truncf %15 : vector<32x128xf32> to vector<32x128xbf16>
      %c0_14 = arith.constant 0 : index
      %c0_15 = arith.constant 0 : index
      %17 = vector.load %arg6[%c0_14, %c0_15] : memref<32x128xbf16, #tpu.memory_space<vmem>>, vector<32x128xbf16>
      tpu.vector_store %arg6[%c0_14, %c0_15], %16 {strides = array<i32>} : memref<32x128xbf16, #tpu.memory_space<vmem>>, vector<32x128xbf16>,
      %cst_16 = arith.constant dense<0.000000e+00> : vector<128xf32>
      %18 = vector.multi_reduction <add>, %15, %cst_16 [0] : vector<32x128xf32> to vector<128xf32>
      %19 = vector.shape_cast %18 : vector<128xf32> to vector<1x128xf32>
      %20 = vector.shape_cast %19 : vector<1x128xf32> to vector<1x1x128xf32>
      %c0_17 = arith.constant 0 : index
      %c0_18 = arith.constant 0 : index
      %c0_19 = arith.constant 0 : index
      %21 = vector.load %arg7[%c0_17, %c0_18, %c0_19] : memref<1x1x128xf32, #tpu.memory_space<vmem>>, vector<1x1x128xf32>
      tpu.vector_store %arg7[%c0_17, %c0_18, %c0_19], %20 {strides = array<i32>} : memref<1x1x128xf32, #tpu.memory_space<vmem>>, vector<1x1x128xf32>,
      %22 = arith.mulf %15, %15 : vector<32x128xf32>
      %cst_20 = arith.constant dense<0.000000e+00> : vector<128xf32>
      %23 = vector.multi_reduction <add>, %22, %cst_20 [0] : vector<32x128xf32> to vector<128xf32>
      %24 = vector.shape_cast %23 : vector<128xf32> to vector<1x128xf32>
      %25 = vector.shape_cast %24 : vector<1x128xf32> to vector<1x1x128xf32>
      %c0_21 = arith.constant 0 : index
      %c0_22 = arith.constant 0 : index
      %c0_23 = arith.constant 0 : index
      %26 = vector.load %arg8[%c0_21, %c0_22, %c0_23] : memref<1x1x128xf32, #tpu.memory_space<vmem>>, vector<1x1x128xf32>
      tpu.vector_store %arg8[%c0_21, %c0_22, %c0_23], %25 {strides = array<i32>} : memref<1x1x128xf32, #tpu.memory_space<vmem>>, vector<1x1x128xf32>,
    } else {
    }
    return
  }
  func.func @transform_0(%arg0: i32, %arg1: i32, %arg2: i32) -> (i32, i32) {
    %c0_i32 = arith.constant 0 : i32
    return %arg0, %arg2 : i32, i32
  }
  func.func @transform_1(%arg0: i32, %arg1: i32, %arg2: i32) -> (i32, i32) {
    %c0_i32 = arith.constant 0 : i32
    return %arg2, %arg1 : i32, i32
  }
  func.func @transform_2(%arg0: i32, %arg1: i32, %arg2: i32) -> (i32, i32) {
    %c0_i32 = arith.constant 0 : i32
    %c0_i32_0 = arith.constant 0 : i32
    return %c0_i32, %arg1 : i32, i32
  }
  func.func @transform_3(%arg0: i32, %arg1: i32, %arg2: i32) -> (i32, i32) {
    %c0_i32 = arith.constant 0 : i32
    return %arg0, %arg1 : i32, i32
  }
  func.func @transform_4(%arg0: i32, %arg1: i32, %arg2: i32) -> (i32, i32, i32) {
    %c0_i32 = arith.constant 0 : i32
    %c0_i32_0 = arith.constant 0 : i32
    return %arg0, %c0_i32, %arg1 : i32, i32, i32
  }
  func.func @transform_5(%arg0: i32, %arg1: i32, %arg2: i32) -> (i32, i32, i32) {
    %c0_i32 = arith.constant 0 : i32
    %c0_i32_0 = arith.constant 0 : i32
    return %arg0, %c0_i32, %arg1 : i32, i32, i32
  }
}

module attributes {stable_mosaic.version = 11 : i64} {
  func.func @_mm_kernel(%arg0: i32, %arg1: i32, %arg2: i32, %arg3: memref<16x1024xbf16, #tpu.memory_space<vmem>>, %arg4: memref<1024x128xbf16, #tpu.memory_space<vmem>>, %arg5: memref<1x128xf32, #tpu.memory_space<vmem>>, %arg6: memref<16x128xbf16, #tpu.memory_space<vmem>>, %arg7: memref<16x128xf32, #tpu.memory_space<vmem>>) attributes {dimension_semantics = [#tpu.dimension_semantics<parallel>, #tpu.dimension_semantics<parallel>, #tpu.dimension_semantics<arbitrary>], iteration_bounds = array<i64: 1, 1, 1>, scalar_prefetch = 0 : i64, scratch_operands = 1 : i64, tpu.core_type = #tpu.core_type<tc>, window_params = [{transform_indices = @transform_0, window_bounds = array<i64: 16, 1024>}, {transform_indices = @transform_1, window_bounds = array<i64: 1024, 128>}, {transform_indices = @transform_2, window_bounds = array<i64: 1, 128>}, {transform_indices = @transform_3, window_bounds = array<i64: 16, 128>}]} {
    %c0_i32 = arith.constant 0 : i32
    %0 = arith.cmpi eq, %arg2, %c0_i32 : i32
    %1 = arith.extui %0 : i1 to i32
    %c0_i32_0 = arith.constant 0 : i32
    %2 = arith.cmpi ne, %1, %c0_i32_0 : i32
    scf.if %2 {
      %cst_10 = arith.constant 0.000000e+00 : f32
      %12 = vector.broadcast %cst_10 : f32 to vector<16x128xf32>
      %c0_11 = arith.constant 0 : index
      %c0_12 = arith.constant 0 : index
      %13 = vector.load %arg7[%c0_11, %c0_12] : memref<16x128xf32, #tpu.memory_space<vmem>>, vector<16x128xf32>
      tpu.vector_store %arg7[%c0_11, %c0_12], %12 {strides = array<i32>} : memref<16x128xf32, #tpu.memory_space<vmem>>, vector<16x128xf32>,
    } else {
    }
    %c0 = arith.constant 0 : index
    %c0_1 = arith.constant 0 : index
    %3 = vector.load %arg7[%c0, %c0_1] : memref<16x128xf32, #tpu.memory_space<vmem>>, vector<16x128xf32>
    %c0_2 = arith.constant 0 : index
    %c0_3 = arith.constant 0 : index
    %4 = vector.load %arg3[%c0_2, %c0_3] : memref<16x1024xbf16, #tpu.memory_space<vmem>>, vector<16x1024xbf16>
    %c0_4 = arith.constant 0 : index
    %c0_5 = arith.constant 0 : index
    %5 = vector.load %arg4[%c0_4, %c0_5] : memref<1024x128xbf16, #tpu.memory_space<vmem>>, vector<1024x128xbf16>
    %cst = arith.constant dense<0.000000e+00> : vector<16x128xf32>
    %6 = tpu.matmul %4, %5, %cst {dimension_numbers = #tpu.dot_dimension_numbers<[1], [0], [0], [1], [0, 0, 1, 1], [], []>} : vector<16x1024xbf16>, vector<1024x128xbf16>, vector<16x128xf32> -> vector<16x128xf32>
    %7 = arith.addf %3, %6 : vector<16x128xf32>
    %c0_6 = arith.constant 0 : index
    %c0_7 = arith.constant 0 : index
    %8 = vector.load %arg7[%c0_6, %c0_7] : memref<16x128xf32, #tpu.memory_space<vmem>>, vector<16x128xf32>
    tpu.vector_store %arg7[%c0_6, %c0_7], %7 {strides = array<i32>} : memref<16x128xf32, #tpu.memory_space<vmem>>, vector<16x128xf32>,
    %c0_i32_8 = arith.constant 0 : i32
    %9 = arith.cmpi eq, %arg2, %c0_i32_8 : i32
    %10 = arith.extui %9 : i1 to i32
    %c0_i32_9 = arith.constant 0 : i32
    %11 = arith.cmpi ne, %10, %c0_i32_9 : i32
    scf.if %11 {
      %c0_10 = arith.constant 0 : index
      %c0_11 = arith.constant 0 : index
      %12 = vector.load %arg7[%c0_10, %c0_11] : memref<16x128xf32, #tpu.memory_space<vmem>>, vector<16x128xf32>
      %c0_12 = arith.constant 0 : index
      %c0_13 = arith.constant 0 : index
      %13 = vector.load %arg5[%c0_12, %c0_13] : memref<1x128xf32, #tpu.memory_space<vmem>>, vector<1x128xf32>
      %14 = vector.broadcast %13 : vector<1x128xf32> to vector<16x128xf32>
      %15 = arith.addf %12, %14 : vector<16x128xf32>
      %16 = arith.truncf %15 : vector<16x128xf32> to vector<16x128xbf16>
      %c0_14 = arith.constant 0 : index
      %c0_15 = arith.constant 0 : index
      %17 = vector.load %arg6[%c0_14, %c0_15] : memref<16x128xbf16, #tpu.memory_space<vmem>>, vector<16x128xbf16>
      tpu.vector_store %arg6[%c0_14, %c0_15], %16 {strides = array<i32>} : memref<16x128xbf16, #tpu.memory_space<vmem>>, vector<16x128xbf16>,
    } else {
    }
    return
  }
  func.func @transform_0(%arg0: i32, %arg1: i32, %arg2: i32) -> (i32, i32) {
    %c0_i32 = arith.constant 0 : i32
    return %arg0, %arg2 : i32, i32
  }
  func.func @transform_1(%arg0: i32, %arg1: i32, %arg2: i32) -> (i32, i32) {
    %c0_i32 = arith.constant 0 : i32
    return %arg2, %arg1 : i32, i32
  }
  func.func @transform_2(%arg0: i32, %arg1: i32, %arg2: i32) -> (i32, i32) {
    %c0_i32 = arith.constant 0 : i32
    %c0_i32_0 = arith.constant 0 : i32
    return %c0_i32, %arg1 : i32, i32
  }
  func.func @transform_3(%arg0: i32, %arg1: i32, %arg2: i32) -> (i32, i32) {
    %c0_i32 = arith.constant 0 : i32
    return %arg0, %arg1 : i32, i32
  }
}

</mosaic_0001>

<bundles_post_ra>
// kernel: _lambda_.5
= control target key start
LH: loop header
LB: loop body
LE: loop exit
PB: predicated region body
PF: predicated region fallthrough
CT: control target
= control target key end

     0   :  { %s1563_s12 = smov 0   ;;  %s1565_s13 = smov 0   ;;  %s1706_s0 = inlined_call_operand.vmem [shape: bf16[512,128], index: 0, kind: input, shape index: {}]   ;;  %s1707_s1 = inlined_call_operand.vmem [shape: bf16[128,128], index: 1, kind: input, shape index: {}]   ;;  %s1708_s2 = inlined_call_operand.vmem [shape: f32[1,128], index: 2, kind: input, shape index: {}]   ;;  %s1709_s3 = inlined_call_operand.vmem [shape: bf16[512,128], index: 3, kind: output, shape index: {}]  }
   0x1   :  { %s1567_s14 = smov 0  }
   0x2 LB: > { %s32_s15 = sadd.s32 1, %s1537_s13  ;;  %p1192_p0 = scmp.ge.s32.totalorder %s1541_s14, 1  ;;  %s1541_s14 = sphi %s1567_s14, %s13_s14   ;;  %s1537_s13 = sphi %s1565_s13, %s1711_s13   ;;  %s1533_s12 = sphi %s1563_s12, %s1710_s12  }
   0x3   : > { %p34_p1 = scmp.ge.s32.totalorder %s32_s15, 2  ;;  %p188_p2 = scmp.lt.s32.totalorder %s1541_s14, 3 }
   0x5   : > { %s1713_s15 = smov (%p34_p1, %s32_s15), 0  ;;  %p189_p3 = pnand %p1192_p0, %p188_p2 }
   0x6   : > { %v1495_v0 = vld [vmem:[%s1707_s1] sm:$0xff] (!%p189_p3)   ;;  %s1193_s18 = sshll.u32 (!%p189_p3), %s1533_s12, 5  ;;  %v1496_v1 = vld [vmem:[%s1707_s1 + $0x8] sm:$0xff] (!%p189_p3)   ;;  %v1497_v2 = vld [vmem:[%s1707_s1 + $0x10] sm:$0xff] (!%p189_p3)  }
   0x7   : > { %192 = sbr.rel (%p189_p3) target bundleno = 294 (0x126), region = 32  ;;  %p230_p4 = scmp.lt.s32.totalorder (!%p189_p3), %s1193_s18, 63  ;;  %1407 = vmatprep.subr.bf16.mxu0 (!%p189_p3), %v1495_v0  ;;  %1455 = vmatprep.subr.bf16.mxu1 (!%p189_p3), %v1495_v0  ;;  %v1498_v3 = vld [vmem:[%s1707_s1 + $0x18] sm:$0xff] (!%p189_p3)   ;;  %v1499_v6 = vld [vmem:[%s1707_s1 + $0x20] sm:$0xff] (!%p189_p3)   ;;  %v1500_v7 = vld [vmem:[%s1707_s1 + $0x28] sm:$0xff] (!%p189_p3)  }
   0x8   : > { %1408 = vmatpush3.bf16.msra.mxu0 (!%p189_p3), %v1495_v0  ;;  %1463 = vmatpush3.bf16.msra.mxu1 (!%p189_p3), %v1495_v0  ;;  %v1501_v8 = vld [vmem:[%s1707_s1 + $0x30] sm:$0xff] (!%p189_p3)   ;;  %v1502_v9 = vld [vmem:[%s1707_s1 + $0x38] sm:$0xff] (!%p189_p3)   ;;  %v1634_v24 = vld [vmem:[%s1708_s2] ss:$0 sm:$0xff] (!%p189_p3) }
   0x9   : > { %1409 = vmatprep.subr.bf16.mxu0 (!%p189_p3), %v1496_v1  ;;  %1456 = vmatprep.subr.bf16.mxu1 (!%p189_p3), %v1496_v1 }
   0xc   : > { %1410 = vmatpush3.bf16.msra.mxu0 (!%p189_p3), %v1496_v1  ;;  %1464 = vmatpush3.bf16.msra.mxu1 (!%p189_p3), %v1496_v1 }
   0xd   : > { %1411 = vmatprep.subr.bf16.mxu0 (!%p189_p3), %v1497_v2  ;;  %1457 = vmatprep.subr.bf16.mxu1 (!%p189_p3), %v1497_v2 }
   0xe   : > { %s1715_s18 = smov (!%p230_p4, %s1193_s18), 63 }
   0xf   : > { %s1194_s23 = sshll.u32 %s1715_s18, 2 }
  0x10   : > { %s1598_s26 = scalar_lea.vmem %s1706_s0, %s1194_s23  ;;  %1412 = vmatpush3.bf16.msra.mxu0 %v1497_v2  ;;  %1465 = vmatpush3.bf16.msra.mxu1 %v1497_v2  ;;  %s1651_s17 = scalar_lea.vmem %s1709_s3, %s1194_s23 }
  0x11   : > { %v1503_v4 = vld [vmem:[%s1598_s26] sm:$0xff]   ;;  %1413 = vmatprep.subr.bf16.mxu0 %v1498_v3  ;;  %1458 = vmatprep.subr.bf16.mxu1 %v1498_v3  ;;  %v1505_v10 = vld [vmem:[%s1598_s26 + $0x8] sm:$0xff]   ;;  %v1507_v12 = vld [vmem:[%s1598_s26 + $0x10] sm:$0xff]  }
  0x12   : > { %v1504_v5 = vld [vmem:[%s1598_s26 + $0x40] sm:$0xff]   ;;  %1423 = vmatprep.mubr.bf16.mxu0 %v1503_v4  ;;  %v1506_v11 = vld [vmem:[%s1598_s26 + $0x48] sm:$0xff]   ;;  %v1508_v13 = vld [vmem:[%s1598_s26 + $0x50] sm:$0xff]  }
  0x13   : > { %1439 = vmatprep.mubr.bf16.mxu1 %v1504_v5  ;;  %v1509_v14 = vld [vmem:[%s1598_s26 + $0x18] sm:$0xff]   ;;  %v1511_v16 = vld [vmem:[%s1598_s26 + $0x20] sm:$0xff]   ;;  %v1513_v18 = vld [vmem:[%s1598_s26 + $0x28] sm:$0xff]  }
  0x14   : > { %1414 = vmatpush3.bf16.msra.mxu0 %v1498_v3  ;;  %1466 = vmatpush3.bf16.msra.mxu1 %v1498_v3  ;;  %v1510_v15 = vld [vmem:[%s1598_s26 + $0x58] sm:$0xff]   ;;  %v1512_v17 = vld [vmem:[%s1598_s26 + $0x60] sm:$0xff]   ;;  %v1514_v19 = vld [vmem:[%s1598_s26 + $0x68] sm:$0xff]  }
  0x15   : > { %1415 = vmatprep.subr.bf16.mxu0 %v1499_v6  ;;  %1459 = vmatprep.subr.bf16.mxu1 %v1499_v6  ;;  %v1515_v20 = vld [vmem:[%s1598_s26 + $0x30] sm:$0xff]   ;;  %v1517_v22 = vld [vmem:[%s1598_s26 + $0x38] sm:$0xff]  }
  0x16   : > { %v1516_v21 = vld [vmem:[%s1598_s26 + $0x70] sm:$0xff]   ;;  %v1518_v23 = vld [vmem:[%s1598_s26 + $0x78] sm:$0xff]  }
  0x18   : > { %1416 = vmatpush3.bf16.msra.mxu0 %v1499_v6  ;;  %1467 = vmatpush3.bf16.msra.mxu1 %v1499_v6 }
  0x19   : > { %1417 = vmatprep.subr.bf16.mxu0 %v1500_v7  ;;  %1460 = vmatprep.subr.bf16.mxu1 %v1500_v7 }
  0x1c   : > { %1418 = vmatpush3.bf16.msra.mxu0 %v1500_v7  ;;  %1468 = vmatpush3.bf16.msra.mxu1 %v1500_v7 }
  0x1d   : > { %1419 = vmatprep.subr.bf16.mxu0 %v1501_v8  ;;  %1461 = vmatprep.subr.bf16.mxu1 %v1501_v8 }
  0x20   : > { %1420 = vmatpush3.bf16.msra.mxu0 %v1501_v8  ;;  %1469 = vmatpush3.bf16.msra.mxu1 %v1501_v8 }
  0x21   : > { %1421 = vmatprep.subr.bf16.mxu0 %v1502_v9  ;;  %1462 = vmatprep.subr.bf16.mxu1 %v1502_v9 }
  0x24   : > { %1422 = vmatpush3.bf16.msra.mxu0 %v1502_v9  ;;  %1470 = vmatpush3.bf16.msra.mxu1 %v1502_v9 }
  0x27   : > { %1424 = vmatmul.mubr.bf16.vlgmr.msra.gmra.mrb[0].mxu0 %v1505_v10  ;;  %1440 = vmatmul.mubr.bf16.vlgmr.msra.gmra.mrb[0].mxu1 %v1506_v11 }
  0x28   : > { %1427 = vmatprep.mubr.bf16.mxu0 %v1507_v12  ;;  %1443 = vmatprep.mubr.bf16.mxu1 %v1508_v13 }
  0x2f   : > { %1428 = vmatmul.mubr.bf16.gmra.mrb[4].mxu0 %v1509_v14  ;;  %1444 = vmatmul.mubr.bf16.gmra.mrb[4].mxu1 %v1510_v15 }
  0x30   : > { %1431 = vmatprep.mubr.bf16.mxu0 %v1511_v16  ;;  %1447 = vmatprep.mubr.bf16.mxu1 %v1512_v17 }
  0x37   : > { %1432 = vmatmul.mubr.bf16.gmra.mrb[8].mxu0 %v1513_v18  ;;  %1448 = vmatmul.mubr.bf16.gmra.mrb[8].mxu1 %v1514_v19 }
  0x38   : > { %1435 = vmatprep.mubr.bf16.mxu0 %v1515_v20  ;;  %1451 = vmatprep.mubr.bf16.mxu1 %v1516_v21 }
  0x3f   : > { %1436 = vmatmul.mubr.bf16.gmra.mrb[12].mxu0 %v1517_v22  ;;  %1452 = vmatmul.mubr.bf16.gmra.mrb[12].mxu1 %v1518_v23 }
  0xfa   : > { %v1425_v25 = vpop.f32.mrb[0].mxu0  ;;  %v1441_v26 = vpop.f32.mrb[0].mxu1 }
  0xfb   : > { %v789_v27 = vadd.f32 %v1425_v25, %v1634_v24  ;;  %v805_v28 = vadd.f32 %v1441_v26, %v1634_v24  ;;  %v554_v29 = vpop.f32.mrb[1].mxu0  ;;  %v618_v30 = vpop.f32.mrb[1].mxu1 }
  0xfc   : > { %v787_v31 = vadd.f32 %v1634_v24, %v554_v29  ;;  %v803_v32 = vadd.f32 %v1634_v24, %v618_v30  ;;  %v1426_v33 = vpop.f32.mrb[2].mxu0  ;;  %v1442_v34 = vpop.f32.mrb[2].mxu1 }
  0xfd   : > { %vm821_vm0 = vcmp.ge.f32.partialorder %v789_v27, 0.0  ;;  %v853_v35 = vmul.f32 0.2, %v789_v27  ;;  %vm837_vm1 = vcmp.ge.f32.partialorder %v805_v28, 0.0  ;;  %v869_v36 = vmul.f32 0.2, %v805_v28 }
  0xfe   : > { %vm819_vm2 = vcmp.ge.f32.partialorder %v787_v31, 0.0  ;;  %v851_v37 = vmul.f32 0.2, %v787_v31  ;;  %vm835_vm3 = vcmp.ge.f32.partialorder %v803_v32, 0.0  ;;  %v867_v38 = vmul.f32 0.2, %v803_v32 }
  0xff   : > { %v790_v39 = vadd.f32 %v1426_v33, %v1634_v24  ;;  %v806_v40 = vadd.f32 %v1442_v34, %v1634_v24  ;;  %v557_v41 = vpop.f32.mrb[3].mxu0  ;;  %v621_v42 = vpop.f32.mrb[3].mxu1  ;;  %v885_v43 = vsel %vm821_vm0, %v789_v27, %v853_v35  ;;  %v901_v44 = vsel %vm837_vm1, %v805_v28, %v869_v36 }
 0x100   : > { %v788_v45 = vadd.f32 %v1634_v24, %v557_v41  ;;  %v804_v46 = vadd.f32 %v1634_v24, %v621_v42  ;;  %v883_v51 = vsel %vm819_vm2, %v787_v31, %v851_v37  ;;  %v899_v52 = vsel %vm835_vm3, %v803_v32, %v867_v38 }
 0x101   : > { %vm822_vm4 = vcmp.ge.f32.partialorder %v790_v39, 0.0  ;;  %v854_v47 = vmul.f32 0.2, %v790_v39  ;;  %vm838_vm5 = vcmp.ge.f32.partialorder %v806_v40, 0.0  ;;  %v870_v48 = vmul.f32 0.2, %v806_v40 }
 0x102   : > { %vm820_vm6 = vcmp.ge.f32.partialorder %v788_v45, 0.0  ;;  %v852_v49 = vmul.f32 0.2, %v788_v45  ;;  %vm836_vm7 = vcmp.ge.f32.partialorder %v804_v46, 0.0  ;;  %v868_v50 = vmul.f32 0.2, %v804_v46 }
 0x103   : > { %v886_v53 = vsel %vm822_vm4, %v790_v39, %v854_v47  ;;  %v902_v54 = vsel %vm838_vm5, %v806_v40, %v870_v48  ;;  %v1429_v55 = vpop.f32.mrb[4].mxu0  ;;  %v1445_v56 = vpop.f32.mrb[4].mxu1 }
 0x104   : > { %v1296_v57 = vpack.c.bf16 %v886_v53, %v885_v43  ;;  %v1336_v58 = vpack.c.bf16 %v902_v54, %v901_v44  ;;  %v884_v59 = vsel %vm820_vm6, %v788_v45, %v852_v49  ;;  %v900_v60 = vsel %vm836_vm7, %v804_v46, %v868_v50  ;;  %v570_v61 = vpop.f32.mrb[5].mxu0  ;;  %v634_v62 = vpop.f32.mrb[5].mxu1 }
 0x105   : > { %v1291_v63 = vpack.c.bf16 %v884_v59, %v883_v51  ;;  %v1331_v0 = vpack.c.bf16 %v900_v60, %v899_v52  ;;  %v793_v1 = vadd.f32 %v1429_v55, %v1634_v24  ;;  %v809_v2 = vadd.f32 %v1445_v56, %v1634_v24  ;;  %v1430_v3 = vpop.f32.mrb[6].mxu0  ;;  %v1446_v4 = vpop.f32.mrb[6].mxu1 }
 0x106   : > { %1368 = vst [vmem:[%s1651_s17 + $0x8] sm:$0xff] %v1296_v57   ;;  %1376 = vst [vmem:[%s1651_s17 + $0x48] sm:$0xff] %v1336_v58   ;;  %v791_v5 = vadd.f32 %v1634_v24, %v570_v61  ;;  %v807_v6 = vadd.f32 %v1634_v24, %v634_v62  ;;  %v794_v7 = vadd.f32 %v1430_v3, %v1634_v24  ;;  %v573_v9 = vpop.f32.mrb[7].mxu0  ;;  %v637_v10 = vpop.f32.mrb[7].mxu1 }
 0x107   : > { %v810_v8 = vadd.f32 %v1446_v4, %v1634_v24  ;;  %1292 = vst [vmem:[%s1651_s17] sm:$0xff] %v1291_v63   ;;  %1375 = vst [vmem:[%s1651_s17 + $0x40] sm:$0xff] %v1331_v0   ;;  %vm825_vm8 = vcmp.ge.f32.partialorder %v793_v1, 0.0  ;;  %v857_v11 = vmul.f32 0.2, %v793_v1  ;;  %vm841_vm9 = vcmp.ge.f32.partialorder %v809_v2, 0.0 }
 0x108   : > { %v873_v12 = vmul.f32 0.2, %v809_v2  ;;  %vm823_vm10 = vcmp.ge.f32.partialorder %v791_v5, 0.0  ;;  %v855_v13 = vmul.f32 0.2, %v791_v5  ;;  %vm839_vm11 = vcmp.ge.f32.partialorder %v807_v6, 0.0 }
 0x109   : > { %v889_v14 = vsel %vm825_vm8, %v793_v1, %v857_v11  ;;  %v871_v15 = vmul.f32 0.2, %v807_v6  ;;  %vm826_vm12 = vcmp.ge.f32.partialorder %v794_v7, 0.0  ;;  %v858_v16 = vmul.f32 0.2, %v794_v7 }
 0x10a   : > { %v905_v17 = vsel %vm841_vm9, %v809_v2, %v873_v12  ;;  %v887_v18 = vsel %vm823_vm10, %v791_v5, %v855_v13  ;;  %vm842_vm13 = vcmp.ge.f32.partialorder %v810_v8, 0.0  ;;  %v874_v19 = vmul.f32 0.2, %v810_v8  ;;  %v1433_v20 = vpop.f32.mrb[8].mxu0  ;;  %v1449_v21 = vpop.f32.mrb[8].mxu1 }
 0x10b   : > { %v890_v22 = vsel %vm826_vm12, %v794_v7, %v858_v16  ;;  %v792_v23 = vadd.f32 %v1634_v24, %v573_v9  ;;  %v808_v25 = vadd.f32 %v1634_v24, %v637_v10  ;;  %v797_v26 = vadd.f32 %v1433_v20, %v1634_v24  ;;  %v586_v27 = vpop.f32.mrb[9].mxu0  ;;  %v650_v28 = vpop.f32.mrb[9].mxu1 }
 0x10c   : > { %v1306_v29 = vpack.c.bf16 %v890_v22, %v889_v14  ;;  %v906_v30 = vsel %vm842_vm13, %v810_v8, %v874_v19  ;;  %v813_v31 = vadd.f32 %v1449_v21, %v1634_v24  ;;  %v795_v32 = vadd.f32 %v1634_v24, %v586_v27  ;;  %v1434_v33 = vpop.f32.mrb[10].mxu0  ;;  %v1450_v34 = vpop.f32.mrb[10].mxu1 }
 0x10d   : > { %v1346_v35 = vpack.c.bf16 %v906_v30, %v905_v17  ;;  %vm824_vm14 = vcmp.ge.f32.partialorder %v792_v23, 0.0  ;;  %v856_v36 = vmul.f32 0.2, %v792_v23  ;;  %vm840_vm15 = vcmp.ge.f32.partialorder %v808_v25, 0.0  ;;  %v589_v37 = vpop.f32.mrb[11].mxu0  ;;  %v653_v38 = vpop.f32.mrb[11].mxu1 }
 0x10e   : > { %1370 = vst [vmem:[%s1651_s17 + $0x18] sm:$0xff] %v1306_v29   ;;  %v872_v39 = vmul.f32 0.2, %v808_v25  ;;  %vm829_vm0 = vcmp.ge.f32.partialorder %v797_v26, 0.0  ;;  %v861_v40 = vmul.f32 0.2, %v797_v26  ;;  %v903_v41 = vsel %vm839_vm11, %v807_v6, %v871_v15 }
 0x10f   : > { %vm845_vm1 = vcmp.ge.f32.partialorder %v813_v31, 0.0  ;;  %1378 = vst [vmem:[%s1651_s17 + $0x58] sm:$0xff] %v1346_v35   ;;  %v888_v42 = vsel %vm824_vm14, %v792_v23, %v856_v36  ;;  %v877_v43 = vmul.f32 0.2, %v813_v31  ;;  %vm827_vm2 = vcmp.ge.f32.partialorder %v795_v32, 0.0 }
 0x110   : > { %v1301_v44 = vpack.c.bf16 %v888_v42, %v887_v18  ;;  %v904_v45 = vsel %vm840_vm15, %v808_v25, %v872_v39  ;;  %v859_v46 = vmul.f32 0.2, %v795_v32  ;;  %v811_v47 = vadd.f32 %v1634_v24, %v650_v28 }
 0x111   : > { %v1341_v48 = vpack.c.bf16 %v904_v45, %v903_v41  ;;  %v893_v49 = vsel %vm829_vm0, %v797_v26, %v861_v40  ;;  %v909_v50 = vsel %vm845_vm1, %v813_v31, %v877_v43  ;;  %v798_v51 = vadd.f32 %v1434_v33, %v1634_v24 }
 0x112   : > { %1369 = vst [vmem:[%s1651_s17 + $0x10] sm:$0xff] %v1301_v44   ;;  %vm843_vm3 = vcmp.ge.f32.partialorder %v811_v47, 0.0  ;;  %v875_v52 = vmul.f32 0.2, %v811_v47  ;;  %v814_v53 = vadd.f32 %v1450_v34, %v1634_v24  ;;  %v796_v54 = vadd.f32 %v1634_v24, %v589_v37  ;;  %v1437_v55 = vpop.f32.mrb[12].mxu0  ;;  %v1453_v56 = vpop.f32.mrb[12].mxu1 }
 0x113   : > { %1377 = vst [vmem:[%s1651_s17 + $0x50] sm:$0xff] %v1341_v48   ;;  %vm830_vm4 = vcmp.ge.f32.partialorder %v798_v51, 0.0  ;;  %v862_v57 = vmul.f32 0.2, %v798_v51  ;;  %v812_v58 = vadd.f32 %v1634_v24, %v653_v38  ;;  %v801_v59 = vadd.f32 %v1437_v55, %v1634_v24  ;;  %v602_v60 = vpop.f32.mrb[13].mxu0  ;;  %v666_v61 = vpop.f32.mrb[13].mxu1 }
 0x114   : > { %v891_v62 = vsel %vm827_vm2, %v795_v32, %v859_v46  ;;  %vm846_vm5 = vcmp.ge.f32.partialorder %v814_v53, 0.0  ;;  %v878_v63 = vmul.f32 0.2, %v814_v53  ;;  %vm828_vm6 = vcmp.ge.f32.partialorder %v796_v54, 0.0  ;;  %v1438_v0 = vpop.f32.mrb[14].mxu0  ;;  %v1454_v1 = vpop.f32.mrb[14].mxu1 }
 0x115   : > { %v894_v2 = vsel %vm830_vm4, %v798_v51, %v862_v57  ;;  %v860_v3 = vmul.f32 0.2, %v796_v54  ;;  %vm844_vm7 = vcmp.ge.f32.partialorder %v812_v58, 0.0  ;;  %v876_v4 = vmul.f32 0.2, %v812_v58  ;;  %v605_v5 = vpop.f32.mrb[15].mxu0 }
 0x116   : > { %v907_v6 = vsel %vm843_vm3, %v811_v47, %v875_v52  ;;  %v1316_v7 = vpack.c.bf16 %v894_v2, %v893_v49  ;;  %v910_v8 = vsel %vm846_vm5, %v814_v53, %v878_v63  ;;  %v865_v9 = vmul.f32 0.2, %v801_v59  ;;  %v669_v10 = vpop.f32.mrb[15].mxu1 }
 0x117   : > { %v1356_v11 = vpack.c.bf16 %v910_v8, %v909_v50  ;;  %v892_v12 = vsel %vm828_vm6, %v796_v54, %v860_v3  ;;  %v908_v13 = vsel %vm844_vm7, %v812_v58, %v876_v4  ;;  %v817_v14 = vadd.f32 %v1453_v56, %v1634_v24 }
 0x118   : > { %1372 = vst [vmem:[%s1651_s17 + $0x28] sm:$0xff] %v1316_v7   ;;  %v1311_v15 = vpack.c.bf16 %v892_v12, %v891_v62  ;;  %v1351_v16 = vpack.c.bf16 %v908_v13, %v907_v6  ;;  %vm833_vm8 = vcmp.ge.f32.partialorder %v801_v59, 0.0  ;;  %v799_v17 = vadd.f32 %v1634_v24, %v602_v60 }
 0x119   : > { %1380 = vst [vmem:[%s1651_s17 + $0x68] sm:$0xff] %v1356_v11   ;;  %vm849_vm9 = vcmp.ge.f32.partialorder %v817_v14, 0.0  ;;  %v881_v18 = vmul.f32 0.2, %v817_v14  ;;  %v815_v19 = vadd.f32 %v1634_v24, %v666_v61  ;;  %v802_v20 = vadd.f32 %v1438_v0, %v1634_v24 }
 0x11a   : > { %1371 = vst [vmem:[%s1651_s17 + $0x20] sm:$0xff] %v1311_v15   ;;  %1379 = vst [vmem:[%s1651_s17 + $0x60] sm:$0xff] %v1351_v16   ;;  %v863_v21 = vmul.f32 0.2, %v799_v17  ;;  %v818_v22 = vadd.f32 %v1454_v1, %v1634_v24  ;;  %v800_v23 = vadd.f32 %v1634_v24, %v605_v5  ;;  %v897_v25 = vsel %vm833_vm8, %v801_v59, %v865_v9 }
 0x11b   : > { %vm831_vm10 = vcmp.ge.f32.partialorder %v799_v17, 0.0  ;;  %vm834_vm11 = vcmp.ge.f32.partialorder %v802_v20, 0.0  ;;  %v913_v26 = vsel %vm849_vm9, %v817_v14, %v881_v18  ;;  %v866_v27 = vmul.f32 0.2, %v802_v20 }
 0x11c   : > { %vm850_vm12 = vcmp.ge.f32.partialorder %v818_v22, 0.0  ;;  %v882_v28 = vmul.f32 0.2, %v818_v22  ;;  %vm847_vm13 = vcmp.ge.f32.partialorder %v815_v19, 0.0  ;;  %vm832_vm14 = vcmp.ge.f32.partialorder %v800_v23, 0.0 }
 0x11d   : > { %v864_v29 = vmul.f32 0.2, %v800_v23  ;;  %v816_v30 = vadd.f32 %v1634_v24, %v669_v10  ;;  %v895_v31 = vsel %vm831_vm10, %v799_v17, %v863_v21  ;;  %v879_v32 = vmul.f32 0.2, %v815_v19 }
 0x11e   : > { %v898_v33 = vsel %vm834_vm11, %v802_v20, %v866_v27  ;;  %v914_v34 = vsel %vm850_vm12, %v818_v22, %v882_v28 }
 0x11f   : > { %v1326_v35 = vpack.c.bf16 %v898_v33, %v897_v25  ;;  %v1366_v36 = vpack.c.bf16 %v914_v34, %v913_v26  ;;  %v896_v37 = vsel %vm832_vm14, %v800_v23, %v864_v29  ;;  %vm848_vm15 = vcmp.ge.f32.partialorder %v816_v30, 0.0 }
 0x120   : > { %v1321_v38 = vpack.c.bf16 %v896_v37, %v895_v31  ;;  %v880_v39 = vmul.f32 0.2, %v816_v30  ;;  %v911_v40 = vsel %vm847_vm13, %v815_v19, %v879_v32 }
 0x121   : > { %1374 = vst [vmem:[%s1651_s17 + $0x38] sm:$0xff] %v1326_v35   ;;  %1382 = vst [vmem:[%s1651_s17 + $0x78] sm:$0xff] %v1366_v36  }
 0x122   : > { %1373 = vst [vmem:[%s1651_s17 + $0x30] sm:$0xff] %v1321_v38   ;;  %v912_v41 = vsel %vm848_vm15, %v816_v30, %v880_v39 }
 0x123   : > { %v1361_v42 = vpack.c.bf16 %v912_v41, %v911_v40 }
 0x125   : > { %1381 = vst [vmem:[%s1651_s17 + $0x70] sm:$0xff] %v1361_v42  }
 0x126 PF: > { %s13_s14 = sadd.s32 1, %s1541_s14   ;;  %s1710_s12 = smov %s1537_s13 }
 0x127   : > { %p10_p5 = scmp.ge.s32.totalorder %s13_s14, 4   ;;  %s1711_s13 = smov %s1713_s15 }
 0x129   :  { %12 = sbr.rel (!%p10_p5) target bundleno = 2 (0x2), region = 76 }

// kernel: _lambda_.6
= control target key start
LH: loop header
LB: loop body
LE: loop exit
PB: predicated region body
PF: predicated region fallthrough
CT: control target
= control target key end

     0   :  { %s1159_s18 = smov 0   ;;  %s1161_s19 = smov 0   ;;  %s1274_s0 = inlined_call_operand.vmem [shape: bf16[128,256], index: 0, kind: input, shape index: {}]   ;;  %s1275_s1 = inlined_call_operand.vmem [shape: bf16[256,128], index: 1, kind: input, shape index: {}]   ;;  %s1276_s2 = inlined_call_operand.vmem [shape: f32[1,128], index: 2, kind: input, shape index: {}]   ;;  %s1277_s3 = inlined_call_operand.vmem [shape: bf16[128,128], index: 3, kind: output, shape index: {0}]   ;;  %s1278_s4 = inlined_call_operand.vmem [shape: f32[2,1,128], index: 4, kind: output, shape index: {1}]   ;;  %s1279_s5 = inlined_call_operand.vmem [shape: f32[2,1,128], index: 5, kind: output, shape index: {2}]  }
   0x1   :  { %s1163_s20 = smov 0  }
   0x2 LB: > { %s35_s21 = sadd.s32 1, %s1123_s19  ;;  %p924_p0 = scmp.ge.s32.totalorder %s1127_s20, 1  ;;  %s1127_s20 = sphi %s1163_s20, %s16_s20   ;;  %s1123_s19 = sphi %s1161_s19, %s1281_s19   ;;  %s1119_s18 = sphi %s1159_s18, %s1280_s18  }
   0x3   : > { %p37_p1 = scmp.ge.s32.totalorder %s35_s21, 2  ;;  %p250_p2 = scmp.lt.s32.totalorder %s1127_s20, 3 }
   0x5   : > { %s1283_s21 = smov (%p37_p1, %s35_s21), 0  ;;  %p251_p3 = pnand %p924_p0, %p250_p2 }
   0x6   : > { %v1077_v0 = vld [vmem:[%s1275_s1 + $0x40] sm:$0xff] (!%p251_p3)   ;;  %s925_s24 = sshll.u32 (!%p251_p3), %s1119_s18, 3  ;;  %v1079_v2 = vld [vmem:[%s1275_s1 + $0x48] sm:$0xff] (!%p251_p3)   ;;  %v1081_v4 = vld [vmem:[%s1275_s1 + $0x50] sm:$0xff] (!%p251_p3)   ;;  %p342_p5 = scmp.lt.s32.totalorder (!%p251_p3), %s1119_s18, 1 }
   0x7   : > { %254 = sbr.rel (%p251_p3) target bundleno = 291 (0x123), region = 32  ;;  %v1078_v1 = vld [vmem:[%s1275_s1] sm:$0xff] (!%p251_p3)   ;;  %997 = vmatprep.subr.bf16.mxu0 (!%p251_p3), %v1077_v0  ;;  %1037 = vmatprep.subr.bf16.mxu1 (!%p251_p3), %v1077_v0  ;;  %v1080_v3 = vld [vmem:[%s1275_s1 + $0x8] sm:$0xff] (!%p251_p3)   ;;  %p311_p4 = scmp.lt.s32.totalorder (!%p251_p3), %s925_s24, 15  ;;  %v1082_v5 = vld [vmem:[%s1275_s1 + $0x10] sm:$0xff] (!%p251_p3)  }
   0x8   : > { %998 = vmatpush3.bf16.msra.mxu0 (!%p251_p3), %v1078_v1  ;;  %1045 = vmatpush3.bf16.msra.mxu1 (!%p251_p3), %v1078_v1  ;;  %v1083_v6 = vld [vmem:[%s1275_s1 + $0x58] sm:$0xff] (!%p251_p3)   ;;  %v1085_v8 = vld [vmem:[%s1275_s1 + $0x60] sm:$0xff] (!%p251_p3)   ;;  %v1087_v10 = vld [vmem:[%s1275_s1 + $0x68] sm:$0xff] (!%p251_p3)  }
   0x9   : > { %999 = vmatprep.subr.bf16.mxu0 (!%p251_p3), %v1079_v2  ;;  %1038 = vmatprep.subr.bf16.mxu1 (!%p251_p3), %v1079_v2  ;;  %v1084_v7 = vld [vmem:[%s1275_s1 + $0x18] sm:$0xff] (!%p251_p3)   ;;  %v1086_v9 = vld [vmem:[%s1275_s1 + $0x20] sm:$0xff] (!%p251_p3)   ;;  %v1088_v13 = vld [vmem:[%s1275_s1 + $0x28] sm:$0xff] (!%p251_p3)  }
   0xa   : > { %v1089_v14 = vld [vmem:[%s1275_s1 + $0x70] sm:$0xff] (!%p251_p3)   ;;  %v1091_v16 = vld [vmem:[%s1275_s1 + $0x78] sm:$0xff] (!%p251_p3)   ;;  %v954_v27 = vld [vmem:[%s1276_s2] ss:$0 sm:$0xff] (!%p251_p3) }
   0xb   : > { %v1090_v15 = vld [vmem:[%s1275_s1 + $0x30] sm:$0xff] (!%p251_p3)   ;;  %v1092_v17 = vld [vmem:[%s1275_s1 + $0x38] sm:$0xff] (!%p251_p3)  }
   0xc   : > { %1000 = vmatpush3.bf16.msra.mxu0 (!%p251_p3), %v1080_v3  ;;  %1046 = vmatpush3.bf16.msra.mxu1 (!%p251_p3), %v1080_v3 }
   0xd   : > { %1001 = vmatprep.subr.bf16.mxu0 (!%p251_p3), %v1081_v4  ;;  %1039 = vmatprep.subr.bf16.mxu1 (!%p251_p3), %v1081_v4 }
   0xe   : > { %s1285_s24 = smov (!%p311_p4, %s925_s24), 15  ;;  %s1287_s18 = smov (!%p342_p5, %s1119_s18), 1 }
   0xf   : > { %s965_s14 = sshll.u32 %s1285_s24, 3  ;;  %s929_s16 = sshll.u32 %s1285_s24, 2 }
  0x10   : > { %1002 = vmatpush3.bf16.msra.mxu0 %v1082_v5  ;;  %1047 = vmatpush3.bf16.msra.mxu1 %v1082_v5  ;;  %s1213_s23 = scalar_lea.vmem %s1274_s0, %s965_s14  ;;  %s347_s26 = scalar_lea.vmem %s1278_s4, %s1287_s18 }
  0x11   : > { %1003 = vmatprep.subr.bf16.mxu0 %v1083_v6  ;;  %1040 = vmatprep.subr.bf16.mxu1 %v1083_v6  ;;  %v1095_v11 = vld [vmem:[%s1213_s23 + $0x4] ss:$8 sps:$4 sm:$0xff]   ;;  %v1093_v18 = vld [vmem:[%s1213_s23] ss:$8 sps:$4 sm:$0xff]   ;;  %v1099_v20 = vld [vmem:[%s1213_s23 + $0x14] ss:$8 sps:$4 sm:$0xff]   ;;  %s353_s29 = scalar_lea.vmem %s1279_s5, %s1287_s18 }
  0x12   : > { %v1098_v12 = vld [vmem:[%s1213_s23 + $0x24] ss:$8 sps:$4 sm:$0xff]   ;;  %583 = vmatprep.mubr.bf16.mxu0 %v1095_v11  ;;  %v1096_v19 = vld [vmem:[%s1213_s23 + $0x20] ss:$8 sps:$4 sm:$0xff]   ;;  %v1102_v21 = vld [vmem:[%s1213_s23 + $0x34] ss:$8 sps:$4 sm:$0xff]  }
  0x13   : > { %599 = vmatprep.mubr.bf16.mxu1 %v1098_v12  ;;  %v1101_v22 = vld [vmem:[%s1213_s23 + $0x10] ss:$8 sps:$4 sm:$0xff]  }
  0x14   : > { %1004 = vmatpush3.bf16.msra.mxu0 %v1084_v7  ;;  %1048 = vmatpush3.bf16.msra.mxu1 %v1084_v7  ;;  %v1104_v23 = vld [vmem:[%s1213_s23 + $0x30] ss:$8 sps:$4 sm:$0xff]   ;;  %s1251_s23 = scalar_lea.vmem %s1277_s3, %s929_s16 }
  0x15   : > { %1005 = vmatprep.subr.bf16.mxu0 %v1085_v8  ;;  %1041 = vmatprep.subr.bf16.mxu1 %v1085_v8 }
  0x18   : > { %1006 = vmatpush3.bf16.msra.mxu0 %v1086_v9  ;;  %1049 = vmatpush3.bf16.msra.mxu1 %v1086_v9 }
  0x19   : > { %1007 = vmatprep.subr.bf16.mxu0 %v1087_v10  ;;  %1042 = vmatprep.subr.bf16.mxu1 %v1087_v10 }
  0x1c   : > { %1008 = vmatpush3.bf16.msra.mxu0 %v1088_v13  ;;  %1050 = vmatpush3.bf16.msra.mxu1 %v1088_v13 }
  0x1d   : > { %1009 = vmatprep.subr.bf16.mxu0 %v1089_v14  ;;  %1043 = vmatprep.subr.bf16.mxu1 %v1089_v14 }
  0x20   : > { %1010 = vmatpush3.bf16.msra.mxu0 %v1090_v15  ;;  %1051 = vmatpush3.bf16.msra.mxu1 %v1090_v15 }
  0x21   : > { %1011 = vmatprep.subr.bf16.mxu0 %v1091_v16  ;;  %1044 = vmatprep.subr.bf16.mxu1 %v1091_v16 }
  0x24   : > { %1012 = vmatpush3.bf16.msra.mxu0 %v1092_v17  ;;  %1052 = vmatpush3.bf16.msra.mxu1 %v1092_v17 }
  0x27   : > { %584 = vmatmul.mubr.bf16.vlgmr.msra.gmra.mrb[0].mxu0 %v1093_v18  ;;  %600 = vmatmul.mubr.bf16.vlgmr.msra.gmra.mrb[0].mxu1 %v1096_v19 }
  0x28   : > { %591 = vmatprep.mubr.bf16.mxu0 %v1099_v20  ;;  %607 = vmatprep.mubr.bf16.mxu1 %v1102_v21 }
  0x2f   : > { %592 = vmatmul.mubr.bf16.gmra.mrb[4].mxu0 %v1101_v22  ;;  %608 = vmatmul.mubr.bf16.gmra.mrb[4].mxu1 %v1104_v23 }
  0xfa   : > { %v1013_v24 = vpop.f32.mrb[0].mxu0  ;;  %v1025_v25 = vpop.f32.mrb[0].mxu1 }
  0xfb   : > { %v1014_v26 = vpop.f32.mrb[1].mxu0  ;;  %v1026_v28 = vpop.f32.mrb[1].mxu1 }
  0xfc   : > { %v1015_v29 = vadd.f32 %v1014_v26, %v1013_v24  ;;  %v1016_v30 = vpop.f32.mrb[2].mxu0  ;;  %v1027_v31 = vadd.f32 %v1026_v28, %v1025_v25  ;;  %v1028_v32 = vpop.f32.mrb[2].mxu1 }
  0xfd   : > { %v1017_v33 = vpop.f32.mrb[3].mxu0  ;;  %v1029_v34 = vpop.f32.mrb[3].mxu1 }
  0xfe   : > { %v650_v35 = vadd.f32 %v1015_v29, %v954_v27  ;;  %v1018_v36 = vadd.f32 %v1017_v33, %v1016_v30  ;;  %v654_v37 = vadd.f32 %v1027_v31, %v954_v27  ;;  %v1030_v38 = vadd.f32 %v1029_v34, %v1028_v32 }
 0x100   : > { %v651_v39 = vadd.f32 %v1018_v36, %v954_v27  ;;  %v655_v40 = vadd.f32 %v1030_v38, %v954_v27  ;;  %v712_v41 = vmul.f32 %v650_v35, %v650_v35  ;;  %v716_v6 = vmul.f32 %v654_v37, %v654_v37 }
 0x102   : > { %v977_v42 = vpack.c.bf16 %v651_v39, %v650_v35  ;;  %v698_v43 = vadd.f32 %v651_v39, %v650_v35  ;;  %v713_v44 = vmul.f32 %v651_v39, %v651_v39  ;;  %v1019_v45 = vpop.f32.mrb[4].mxu0  ;;  %v987_v46 = vpack.c.bf16 %v655_v40, %v654_v37  ;;  %v1031_v47 = vpop.f32.mrb[4].mxu1 }
 0x103   : > { %v1020_v48 = vpop.f32.mrb[5].mxu0  ;;  %v1032_v49 = vpop.f32.mrb[5].mxu1  ;;  %v717_v9 = vmul.f32 %v655_v40, %v655_v40 }
 0x104   : > { %978 = vst [vmem:[%s1251_s23] sm:$0xff] %v977_v42   ;;  %v720_v50 = vadd.f32 %v713_v44, %v712_v41  ;;  %995 = vst [vmem:[%s1251_s23 + $0x10] sm:$0xff] %v987_v46   ;;  %v1021_v51 = vadd.f32 %v1020_v48, %v1019_v45  ;;  %v1022_v52 = vpop.f32.mrb[6].mxu0  ;;  %v1033_v53 = vadd.f32 %v1032_v49, %v1031_v47  ;;  %v1034_v54 = vpop.f32.mrb[6].mxu1 }
 0x105   : > { %v1023_v55 = vpop.f32.mrb[7].mxu0  ;;  %v1035_v56 = vpop.f32.mrb[7].mxu1 }
 0x106   : > { %v652_v57 = vadd.f32 %v1021_v51, %v954_v27  ;;  %v1024_v58 = vadd.f32 %v1023_v55, %v1022_v52  ;;  %v1036_v59 = vadd.f32 %v1035_v56, %v1034_v54  ;;  %v656_v60 = vadd.f32 %v1033_v53, %v954_v27 }
 0x108   : > { %v699_v61 = vadd.f32 %v698_v43, %v652_v57  ;;  %v714_v62 = vmul.f32 %v652_v57, %v652_v57  ;;  %v653_v63 = vadd.f32 %v1024_v58, %v954_v27  ;;  %v657_v0 = vadd.f32 %v1036_v59, %v954_v27 }
 0x109   : > { %v718_v12 = vmul.f32 %v656_v60, %v656_v60 }
 0x10a   : > { %v721_v1 = vadd.f32 %v720_v50, %v714_v62  ;;  %v982_v2 = vpack.c.bf16 %v653_v63, %v652_v57  ;;  %v700_v3 = vadd.f32 %v699_v61, %v653_v63  ;;  %v715_v4 = vmul.f32 %v653_v63, %v653_v63 }
 0x10b   : > { %v992_v5 = vpack.c.bf16 %v657_v0, %v656_v60  ;;  %v719_v17 = vmul.f32 %v657_v0, %v657_v0 }
 0x10c   : > { %994 = vst [vmem:[%s1251_s23 + $0x8] sm:$0xff] %v982_v2   ;;  %v701_v7 = vadd.f32 %v700_v3, %v654_v37  ;;  %v722_v8 = vadd.f32 %v721_v1, %v715_v4 }
 0x10d   : > { %996 = vst [vmem:[%s1251_s23 + $0x18] sm:$0xff] %v992_v5  }
 0x10e   : > { %v723_v10 = vadd.f32 %v722_v8, %v716_v6  ;;  %v702_v11 = vadd.f32 %v701_v7, %v655_v40 }
 0x110   : > { %v703_v13 = vadd.f32 %v702_v11, %v656_v60  ;;  %v724_v14 = vadd.f32 %v723_v10, %v717_v9 }
 0x112   : > { %v725_v15 = vadd.f32 %v724_v14, %v718_v12  ;;  %v704_v16 = vadd.f32 %v703_v13, %v657_v0 }
 0x114   : > { %v705_v18 = vrot.slane %v704_v16, 4  ;;  %v726_v19 = vadd.f32 %v725_v15, %v719_v17 }
 0x116   : > { %v706_v20 = vadd.f32 %v705_v18, %v704_v16  ;;  %v727_v21 = vrot.slane %v726_v19, 4 }
 0x118   : > { %v707_v22 = vrot.slane %v706_v20, 2  ;;  %v728_v23 = vadd.f32 %v727_v21, %v726_v19 }
 0x11a   : > { %v708_v24 = vadd.f32 %v707_v22, %v706_v20  ;;  %v729_v25 = vrot.slane %v728_v23, 2 }
 0x11c   : > { %v709_v26 = vrot.slane %v708_v24, 1  ;;  %v730_v27 = vadd.f32 %v729_v25, %v728_v23 }
 0x11e   : > { %v710_v28 = vadd.f32 %v709_v26, %v708_v24  ;;  %v731_v29 = vrot.slane %v730_v27, 1 }
 0x120   : > { %711 = vst [vmem:[%s347_s26] sm:$0x1] %v710_v28  ;;  %v732_v30 = vadd.f32 %v731_v29, %v730_v27 }
 0x122   : > { %733 = vst [vmem:[%s353_s29] sm:$0x1] %v732_v30 }
 0x123 PF: > { %s16_s20 = sadd.s32 1, %s1127_s20   ;;  %s1280_s18 = smov %s1123_s19 }
 0x124   : > { %p13_p6 = scmp.ge.s32.totalorder %s16_s20, 4   ;;  %s1281_s19 = smov %s1283_s21 }
 0x126   :  { %15 = sbr.rel (!%p13_p6) target bundleno = 2 (0x2), region = 100 }

// kernel: _lambda_.7
= control target key start
LH: loop header
LB: loop body
LE: loop exit
PB: predicated region body
PF: predicated region fallthrough
CT: control target
= control target key end

     0   :  { %s1176_s18 = smov 0   ;;  %s1178_s19 = smov 0   ;;  %s1323_s0 = inlined_call_operand.vmem [shape: bf16[32,512], index: 0, kind: input, shape index: {}]   ;;  %s1324_s1 = inlined_call_operand.vmem [shape: bf16[512,128], index: 1, kind: input, shape index: {}]   ;;  %s1325_s2 = inlined_call_operand.vmem [shape: f32[1,128], index: 2, kind: input, shape index: {}]   ;;  %s1326_s3 = inlined_call_operand.vmem [shape: bf16[32,128], index: 3, kind: output, shape index: {0}]   ;;  %s1327_s4 = inlined_call_operand.vmem [shape: f32[2,1,128], index: 4, kind: output, shape index: {1}]   ;;  %s1328_s5 = inlined_call_operand.vmem [shape: f32[2,1,128], index: 5, kind: output, shape index: {2}]  }
   0x1   :  { %s1180_s20 = smov 0  }
   0x2 LB: > { %s35_s21 = sadd.s32 1, %s1140_s19  ;;  %p961_p0 = scmp.ge.s32.totalorder %s1144_s20, 1  ;;  %s1144_s20 = sphi %s1180_s20, %s16_s20   ;;  %s1140_s19 = sphi %s1178_s19, %s1330_s19   ;;  %s1136_s18 = sphi %s1176_s18, %s1329_s18  }
   0x3   : > { %p37_p1 = scmp.ge.s32.totalorder %s35_s21, 2  ;;  %p250_p2 = scmp.lt.s32.totalorder %s1144_s20, 3 }
   0x5   : > { %s1332_s21 = smov (%p37_p1, %s35_s21), 0  ;;  %p251_p3 = pnand %p961_p0, %p250_p2 }
   0x6   : > { %v1084_v0 = vld [vmem:[%s1324_s1 + $0x40] sm:$0xff] (!%p251_p3)   ;;  %v1088_v4 = vld [vmem:[%s1324_s1 + $0x48] sm:$0xff] (!%p251_p3)   ;;  %v1092_v8 = vld [vmem:[%s1324_s1 + $0x50] sm:$0xff] (!%p251_p3)   ;;  %s962_s8 = sshll.u32 (!%p251_p3), %s1136_s18, 1  ;;  %p342_p5 = scmp.lt.s32.totalorder (!%p251_p3), %s1136_s18, 1 }
   0x7   : > { %254 = sbr.rel (%p251_p3) target bundleno = 279 (0x117), region = 32  ;;  %v1085_v1 = vld [vmem:[%s1324_s1 + $0xc0] sm:$0xff] (!%p251_p3)   ;;  %1016 = vmatprep.subr.bf16.mxu0 (!%p251_p3), %v1084_v0  ;;  %v1089_v5 = vld [vmem:[%s1324_s1 + $0xc8] sm:$0xff] (!%p251_p3)   ;;  %v1093_v9 = vld [vmem:[%s1324_s1 + $0xd0] sm:$0xff] (!%p251_p3)   ;;  %p311_p4 = scmp.lt.s32.totalorder (!%p251_p3), %s962_s8, 3 }
   0x8   : > { %v1086_v2 = vld [vmem:[%s1324_s1] sm:$0xff] (!%p251_p3)   ;;  %1038 = vmatprep.subr.bf16.mxu1 (!%p251_p3), %v1085_v1  ;;  %v1090_v6 = vld [vmem:[%s1324_s1 + $0x8] sm:$0xff] (!%p251_p3)   ;;  %v1094_v10 = vld [vmem:[%s1324_s1 + $0x10] sm:$0xff] (!%p251_p3)  }
   0x9   : > { %v1087_v3 = vld [vmem:[%s1324_s1 + $0x80] sm:$0xff] (!%p251_p3)   ;;  %1017 = vmatpush3.bf16.msra.mxu0 (!%p251_p3), %v1086_v2  ;;  %v1091_v7 = vld [vmem:[%s1324_s1 + $0x88] sm:$0xff] (!%p251_p3)   ;;  %v1095_v11 = vld [vmem:[%s1324_s1 + $0x90] sm:$0xff] (!%p251_p3)  }
   0xa   : > { %1039 = vmatpush3.bf16.msra.mxu1 (!%p251_p3), %v1087_v3  ;;  %1018 = vmatprep.subr.bf16.mxu0 (!%p251_p3), %v1088_v4  ;;  %v1096_v12 = vld [vmem:[%s1324_s1 + $0x58] sm:$0xff] (!%p251_p3)   ;;  %v1100_v16 = vld [vmem:[%s1324_s1 + $0x60] sm:$0xff] (!%p251_p3)   ;;  %v1104_v20 = vld [vmem:[%s1324_s1 + $0x68] sm:$0xff] (!%p251_p3)  }
   0xb   : > { %1040 = vmatprep.subr.bf16.mxu1 (!%p251_p3), %v1089_v5  ;;  %v1097_v13 = vld [vmem:[%s1324_s1 + $0xd8] sm:$0xff] (!%p251_p3)   ;;  %v1101_v17 = vld [vmem:[%s1324_s1 + $0xe0] sm:$0xff] (!%p251_p3)   ;;  %v1105_v21 = vld [vmem:[%s1324_s1 + $0xe8] sm:$0xff] (!%p251_p3)  }
   0xc   : > { %v1098_v14 = vld [vmem:[%s1324_s1 + $0x18] sm:$0xff] (!%p251_p3)   ;;  %v1102_v18 = vld [vmem:[%s1324_s1 + $0x20] sm:$0xff] (!%p251_p3)   ;;  %v1106_v22 = vld [vmem:[%s1324_s1 + $0x28] sm:$0xff] (!%p251_p3)  }
   0xd   : > { %1019 = vmatpush3.bf16.msra.mxu0 (!%p251_p3), %v1090_v6  ;;  %v1099_v15 = vld [vmem:[%s1324_s1 + $0x98] sm:$0xff] (!%p251_p3)   ;;  %v1103_v19 = vld [vmem:[%s1324_s1 + $0xa0] sm:$0xff] (!%p251_p3)   ;;  %v1107_v23 = vld [vmem:[%s1324_s1 + $0xa8] sm:$0xff] (!%p251_p3)  }
   0xe   : > { %1041 = vmatpush3.bf16.msra.mxu1 %v1091_v7  ;;  %1020 = vmatprep.subr.bf16.mxu0 %v1092_v8  ;;  %s1334_s8 = smov (!%p311_p4, %s962_s8), 3  ;;  %v1108_v24 = vld [vmem:[%s1324_s1 + $0x70] sm:$0xff]   ;;  %v1112_v28 = vld [vmem:[%s1324_s1 + $0x78] sm:$0xff]   ;;  %v1003_v45 = vld [vmem:[%s1325_s2] ss:$0 sm:$0xff]  ;;  %s1336_s18 = smov (!%p342_p5, %s1136_s18), 1 }
   0xf   : > { %1042 = vmatprep.subr.bf16.mxu1 %v1093_v9  ;;  %v1109_v25 = vld [vmem:[%s1324_s1 + $0xf0] sm:$0xff]   ;;  %s1008_s11 = sshll.u32 %s1334_s8, 4  ;;  %v1113_v29 = vld [vmem:[%s1324_s1 + $0xf8] sm:$0xff]   ;;  %s966_s6 = sshll.u32 %s1334_s8, 2 }
  0x10   : > { %v1110_v26 = vld [vmem:[%s1324_s1 + $0x30] sm:$0xff]   ;;  %s318_s24 = scalar_lea.vmem %s1323_s0, %s1008_s11  ;;  %v1114_v30 = vld [vmem:[%s1324_s1 + $0x38] sm:$0xff]   ;;  %s340_s10 = scalar_lea.vmem %s1326_s3, %s966_s6 }
  0x11   : > { %1021 = vmatpush3.bf16.msra.mxu0 %v1094_v10  ;;  %v1111_v27 = vld [vmem:[%s1324_s1 + $0xb0] sm:$0xff]   ;;  %v1115_v31 = vld [vmem:[%s1324_s1 + $0xb8] sm:$0xff]   ;;  %s347_s12 = scalar_lea.vmem %s1327_s4, %s1336_s18  ;;  %s353_s15 = scalar_lea.vmem %s1328_s5, %s1336_s18 }
  0x12   : > { %1043 = vmatpush3.bf16.msra.mxu1 %v1095_v11  ;;  %1022 = vmatprep.subr.bf16.mxu0 %v1096_v12  ;;  %v1116_v32 = vld [vmem:[%s318_s24] ss:$16 sps:$4 sm:$0xff]   ;;  %v1118_v33 = vld [vmem:[%s318_s24 + $0x4] ss:$16 sps:$4 sm:$0xff]   ;;  %v1119_v34 = vld [vmem:[%s318_s24 + $0x8] ss:$16 sps:$4 sm:$0xff]  }
  0x13   : > { %1044 = vmatprep.subr.bf16.mxu1 %v1097_v13  ;;  %v1121_v35 = vld [vmem:[%s318_s24 + $0xc] ss:$16 sps:$4 sm:$0xff]   ;;  %675 = vmatprep.mubr.bf16.mxu0 %v1118_v33 }
  0x14   : > { %716 = vmatprep.mubr.bf16.mxu1 %v1121_v35 }
  0x15   : > { %1023 = vmatpush3.bf16.msra.mxu0 %v1098_v14 }
  0x16   : > { %1045 = vmatpush3.bf16.msra.mxu1 %v1099_v15  ;;  %1024 = vmatprep.subr.bf16.mxu0 %v1100_v16 }
  0x17   : > { %1046 = vmatprep.subr.bf16.mxu1 %v1101_v17 }
  0x19   : > { %1025 = vmatpush3.bf16.msra.mxu0 %v1102_v18 }
  0x1a   : > { %1047 = vmatpush3.bf16.msra.mxu1 %v1103_v19  ;;  %1026 = vmatprep.subr.bf16.mxu0 %v1104_v20 }
  0x1b   : > { %1048 = vmatprep.subr.bf16.mxu1 %v1105_v21 }
  0x1d   : > { %1027 = vmatpush3.bf16.msra.mxu0 %v1106_v22 }
  0x1e   : > { %1049 = vmatpush3.bf16.msra.mxu1 %v1107_v23  ;;  %1028 = vmatprep.subr.bf16.mxu0 %v1108_v24 }
  0x1f   : > { %1050 = vmatprep.subr.bf16.mxu1 %v1109_v25 }
  0x21   : > { %1029 = vmatpush3.bf16.msra.mxu0 %v1110_v26 }
  0x22   : > { %1051 = vmatpush3.bf16.msra.mxu1 %v1111_v27  ;;  %1030 = vmatprep.subr.bf16.mxu0 %v1112_v28 }
  0x23   : > { %1052 = vmatprep.subr.bf16.mxu1 %v1113_v29 }
  0x25   : > { %1031 = vmatpush3.bf16.msra.mxu0 %v1114_v30 }
  0x26   : > { %1053 = vmatpush3.bf16.msra.mxu1 %v1115_v31 }
  0x28   : > { %676 = vmatmul.mubr.bf16.vlgmr.msra.gmra.mrb[0].mxu0 %v1116_v32 }
  0x29   : > { %717 = vmatmul.mubr.bf16.vlgmr.msra.gmra.mrb[0].mxu1 %v1119_v34 }
  0xfb   : > { %v1032_v36 = vpop.f32.mrb[0].mxu0 }
  0xfc   : > { %v1054_v37 = vpop.f32.mrb[0].mxu1  ;;  %v1033_v38 = vpop.f32.mrb[1].mxu0 }
  0xfd   : > { %v1034_v39 = vadd.f32 %v1033_v38, %v1032_v36  ;;  %v1055_v40 = vpop.f32.mrb[1].mxu1  ;;  %v1035_v41 = vpop.f32.mrb[2].mxu0 }
  0xfe   : > { %v1056_v42 = vadd.f32 %v1055_v40, %v1054_v37  ;;  %v1057_v43 = vpop.f32.mrb[2].mxu1  ;;  %v1036_v44 = vpop.f32.mrb[3].mxu0 }
  0xff   : > { %v1037_v46 = vadd.f32 %v1036_v44, %v1035_v41  ;;  %v1058_v47 = vpop.f32.mrb[3].mxu1 }
 0x100   : > { %v719_v48 = vadd.f32 %v1056_v42, %v1034_v39  ;;  %v1059_v49 = vadd.f32 %v1058_v47, %v1057_v43 }
 0x102   : > { %v741_v50 = vadd.f32 %v1003_v45, %v719_v48  ;;  %v722_v51 = vadd.f32 %v1059_v49, %v1037_v46 }
 0x104   : > { %v742_v52 = vadd.f32 %v1003_v45, %v722_v51  ;;  %v761_v53 = vmul.f32 %v741_v50, %v741_v50 }
 0x106   : > { %v1014_v54 = vpack.c.bf16 %v742_v52, %v741_v50  ;;  %v753_v55 = vadd.f32 %v742_v52, %v741_v50  ;;  %v762_v56 = vmul.f32 %v742_v52, %v742_v52 }
 0x108   : > { %1015 = vst [vmem:[%s340_s10] sm:$0xff] %v1014_v54   ;;  %v754_v57 = vrot.slane %v753_v55, 4  ;;  %v763_v58 = vadd.f32 %v762_v56, %v761_v53 }
 0x10a   : > { %v755_v59 = vadd.f32 %v754_v57, %v753_v55  ;;  %v764_v60 = vrot.slane %v763_v58, 4 }
 0x10c   : > { %v756_v61 = vrot.slane %v755_v59, 2  ;;  %v765_v62 = vadd.f32 %v764_v60, %v763_v58 }
 0x10e   : > { %v757_v63 = vadd.f32 %v756_v61, %v755_v59  ;;  %v766_v0 = vrot.slane %v765_v62, 2 }
 0x110   : > { %v758_v1 = vrot.slane %v757_v63, 1  ;;  %v767_v2 = vadd.f32 %v766_v0, %v765_v62 }
 0x112   : > { %v759_v3 = vadd.f32 %v758_v1, %v757_v63  ;;  %v768_v4 = vrot.slane %v767_v2, 1 }
 0x114   : > { %760 = vst [vmem:[%s347_s12] sm:$0x1] %v759_v3  ;;  %v769_v5 = vadd.f32 %v768_v4, %v767_v2 }
 0x116   : > { %770 = vst [vmem:[%s353_s15] sm:$0x1] %v769_v5 }
 0x117 PF: > { %s16_s20 = sadd.s32 1, %s1144_s20   ;;  %s1329_s18 = smov %s1140_s19 }
 0x118   : > { %p13_p6 = scmp.ge.s32.totalorder %s16_s20, 4   ;;  %s1330_s19 = smov %s1332_s21 }
 0x11a   :  { %15 = sbr.rel (!%p13_p6) target bundleno = 2 (0x2), region = 100 }

// kernel: _lambda_.8
= control target key start
LH: loop header
LB: loop body
LE: loop exit
PB: predicated region body
PF: predicated region fallthrough
CT: control target
= control target key end

     0   :  { %s1477_s1 = inlined_call_operand.vmem [shape: bf16[1024,128], index: 1, kind: input, shape index: {}]   ;;  %s1478_s0 = inlined_call_operand.vmem [shape: bf16[32,1024], index: 0, kind: input, shape index: {}]   ;;  %s1479_s2 = inlined_call_operand.vmem [shape: f32[1,128], index: 2, kind: input, shape index: {}]   ;;  %s1480_s3 = inlined_call_operand.vmem [shape: bf16[32,128], index: 3, kind: output, shape index: {0}]   ;;  %s1481_s4 = inlined_call_operand.vmem [shape: f32[1,1,128], index: 4, kind: output, shape index: {1}]   ;;  %s1482_s5 = inlined_call_operand.vmem [shape: f32[1,1,128], index: 5, kind: output, shape index: {2}]  }
   0x1   :  { %v1128_v0 = vld [vmem:[%s1477_s1 + $0x40] sm:$0xff]   ;;  %v1132_v4 = vld [vmem:[%s1477_s1 + $0x48] sm:$0xff]   ;;  %v1136_v8 = vld [vmem:[%s1477_s1 + $0x50] sm:$0xff]  }
   0x2   :  { %v1129_v1 = vld [vmem:[%s1477_s1 + $0xc0] sm:$0xff]   ;;  %1016 = vmatprep.subr.bf16.mxu0 %v1128_v0  ;;  %v1133_v5 = vld [vmem:[%s1477_s1 + $0xc8] sm:$0xff]   ;;  %v1137_v9 = vld [vmem:[%s1477_s1 + $0xd0] sm:$0xff]  }
   0x3   :  { %v1130_v2 = vld [vmem:[%s1477_s1] sm:$0xff]   ;;  %1044 = vmatprep.subr.bf16.mxu1 %v1129_v1  ;;  %v1134_v6 = vld [vmem:[%s1477_s1 + $0x8] sm:$0xff]   ;;  %v1138_v10 = vld [vmem:[%s1477_s1 + $0x10] sm:$0xff]  }
   0x4   :  { %v1131_v3 = vld [vmem:[%s1477_s1 + $0x80] sm:$0xff]   ;;  %1017 = vmatpush3.bf16.msra.mxu0 %v1130_v2  ;;  %v1135_v7 = vld [vmem:[%s1477_s1 + $0x88] sm:$0xff]   ;;  %v1139_v11 = vld [vmem:[%s1477_s1 + $0x90] sm:$0xff]  }
   0x5   :  { %1045 = vmatpush3.bf16.msra.mxu1 %v1131_v3  ;;  %1018 = vmatprep.subr.bf16.mxu0 %v1132_v4  ;;  %v1140_v12 = vld [vmem:[%s1477_s1 + $0x58] sm:$0xff]   ;;  %v1144_v16 = vld [vmem:[%s1477_s1 + $0x60] sm:$0xff]   ;;  %v1148_v20 = vld [vmem:[%s1477_s1 + $0x68] sm:$0xff]  }
   0x6   :  { %1046 = vmatprep.subr.bf16.mxu1 %v1133_v5  ;;  %v1141_v13 = vld [vmem:[%s1477_s1 + $0xd8] sm:$0xff]   ;;  %v1145_v17 = vld [vmem:[%s1477_s1 + $0xe0] sm:$0xff]   ;;  %v1149_v21 = vld [vmem:[%s1477_s1 + $0xe8] sm:$0xff]  }
   0x7   :  { %v1142_v14 = vld [vmem:[%s1477_s1 + $0x18] sm:$0xff]   ;;  %v1146_v18 = vld [vmem:[%s1477_s1 + $0x20] sm:$0xff]   ;;  %v1150_v22 = vld [vmem:[%s1477_s1 + $0x28] sm:$0xff]  }
   0x8   :  { %1019 = vmatpush3.bf16.msra.mxu0 %v1134_v6  ;;  %v1143_v15 = vld [vmem:[%s1477_s1 + $0x98] sm:$0xff]   ;;  %v1147_v19 = vld [vmem:[%s1477_s1 + $0xa0] sm:$0xff]   ;;  %v1151_v23 = vld [vmem:[%s1477_s1 + $0xa8] sm:$0xff]  }
   0x9   :  { %1047 = vmatpush3.bf16.msra.mxu1 %v1135_v7  ;;  %1020 = vmatprep.subr.bf16.mxu0 %v1136_v8  ;;  %v1152_v24 = vld [vmem:[%s1477_s1 + $0x70] sm:$0xff]   ;;  %v1156_v28 = vld [vmem:[%s1477_s1 + $0x78] sm:$0xff]   ;;  %v30_v32 = vld [vmem:[%s1478_s0] sm:$0xff] }
   0xa   :  { %1048 = vmatprep.subr.bf16.mxu1 %v1137_v9  ;;  %v1153_v25 = vld [vmem:[%s1477_s1 + $0xf0] sm:$0xff]   ;;  %v1157_v29 = vld [vmem:[%s1477_s1 + $0xf8] sm:$0xff]   ;;  %v34_v33 = vld [vmem:[%s1478_s0 + $0x20] sm:$0xff] }
   0xb   :  { %v1154_v26 = vld [vmem:[%s1477_s1 + $0x30] sm:$0xff]   ;;  %v1158_v30 = vld [vmem:[%s1477_s1 + $0x38] sm:$0xff]   ;;  %v31_v34 = vld [vmem:[%s1478_s0 + $0x8] sm:$0xff]  ;;  %v916_v35 = vcombine.low %v30_v32, %v34_v33  ;;  %v917_v36 = vcombine.high %v30_v32, %v34_v33 }
   0xc   :  { %1021 = vmatpush3.bf16.msra.mxu0 %v1138_v10  ;;  %v1155_v27 = vld [vmem:[%s1477_s1 + $0xb0] sm:$0xff]   ;;  %v1159_v31 = vld [vmem:[%s1477_s1 + $0xb8] sm:$0xff]   ;;  %v35_v37 = vld [vmem:[%s1478_s0 + $0x28] sm:$0xff] }
   0xd   :  { %1049 = vmatpush3.bf16.msra.mxu1 %v1139_v11  ;;  %1022 = vmatprep.subr.bf16.mxu0 %v1140_v12  ;;  %v918_v38 = vcombine.low %v31_v34, %v35_v37  ;;  %v919_v39 = vcombine.high %v31_v34, %v35_v37  ;;  %v1160_v40 = vld [vmem:[%s1477_s1 + $0x140] sm:$0xff]   ;;  %v1164_v44 = vld [vmem:[%s1477_s1 + $0x148] sm:$0xff]   ;;  %v1168_v48 = vld [vmem:[%s1477_s1 + $0x150] sm:$0xff]  }
   0xe   :  { %1050 = vmatprep.subr.bf16.mxu1 %v1141_v13  ;;  %670 = vmatprep.mubr.bf16.mxu0 %v917_v36  ;;  %v1161_v41 = vld [vmem:[%s1477_s1 + $0x1c0] sm:$0xff]   ;;  %v1165_v45 = vld [vmem:[%s1477_s1 + $0x1c8] sm:$0xff]   ;;  %v1169_v49 = vld [vmem:[%s1477_s1 + $0x1d0] sm:$0xff]  }
   0xf   :  { %719 = vmatprep.mubr.bf16.mxu1 %v919_v39  ;;  %v1162_v42 = vld [vmem:[%s1477_s1 + $0x100] sm:$0xff]   ;;  %v1166_v46 = vld [vmem:[%s1477_s1 + $0x108] sm:$0xff]   ;;  %v1170_v50 = vld [vmem:[%s1477_s1 + $0x110] sm:$0xff]  }
  0x10   :  { %1023 = vmatpush3.bf16.msra.mxu0 %v1142_v14  ;;  %v1163_v43 = vld [vmem:[%s1477_s1 + $0x180] sm:$0xff]   ;;  %v1167_v47 = vld [vmem:[%s1477_s1 + $0x188] sm:$0xff]   ;;  %v1171_v51 = vld [vmem:[%s1477_s1 + $0x190] sm:$0xff]  }
  0x11   :  { %1051 = vmatpush3.bf16.msra.mxu1 %v1143_v15  ;;  %1024 = vmatprep.subr.bf16.mxu0 %v1144_v16  ;;  %v1172_v52 = vld [vmem:[%s1477_s1 + $0x158] sm:$0xff]   ;;  %v1176_v56 = vld [vmem:[%s1477_s1 + $0x160] sm:$0xff]   ;;  %v39_v63 = vld [vmem:[%s1478_s0 + $0x48] sm:$0xff] }
  0x12   :  { %1052 = vmatprep.subr.bf16.mxu1 %v1145_v17  ;;  %v1173_v53 = vld [vmem:[%s1477_s1 + $0x1d8] sm:$0xff]   ;;  %v1177_v57 = vld [vmem:[%s1477_s1 + $0x1e0] sm:$0xff]   ;;  %v43_v0 = vld [vmem:[%s1478_s0 + $0x68] sm:$0xff] }
  0x13   :  { %v1174_v54 = vld [vmem:[%s1477_s1 + $0x118] sm:$0xff]   ;;  %v1178_v58 = vld [vmem:[%s1477_s1 + $0x120] sm:$0xff]   ;;  %v927_v2 = vcombine.high %v39_v63, %v43_v0  ;;  %v1180_v3 = vld [vmem:[%s1477_s1 + $0x168] sm:$0xff]   ;;  %v926_v4 = vcombine.low %v39_v63, %v43_v0 }
  0x14   :  { %1025 = vmatpush3.bf16.msra.mxu0 %v1146_v18  ;;  %v1175_v55 = vld [vmem:[%s1477_s1 + $0x198] sm:$0xff]   ;;  %v1179_v59 = vld [vmem:[%s1477_s1 + $0x1a0] sm:$0xff]   ;;  %v1181_v5 = vld [vmem:[%s1477_s1 + $0x1e8] sm:$0xff]  }
  0x15   :  { %1053 = vmatpush3.bf16.msra.mxu1 %v1147_v19  ;;  %1026 = vmatprep.subr.bf16.mxu0 %v1148_v20  ;;  %v38_v60 = vld [vmem:[%s1478_s0 + $0x40] sm:$0xff]  ;;  %v1182_v6 = vld [vmem:[%s1477_s1 + $0x128] sm:$0xff]   ;;  %v1184_v8 = vld [vmem:[%s1477_s1 + $0x170] sm:$0xff]  }
  0x16   :  { %1054 = vmatprep.subr.bf16.mxu1 %v1149_v21  ;;  %v42_v61 = vld [vmem:[%s1478_s0 + $0x60] sm:$0xff]  ;;  %v1183_v7 = vld [vmem:[%s1477_s1 + $0x1a8] sm:$0xff]   ;;  %v1185_v9 = vld [vmem:[%s1477_s1 + $0x1f0] sm:$0xff]  }
  0x17   :  { %v925_v62 = vcombine.high %v38_v60, %v42_v61  ;;  %v924_v1 = vcombine.low %v38_v60, %v42_v61  ;;  %v1186_v10 = vld [vmem:[%s1477_s1 + $0x130] sm:$0xff]   ;;  %v1188_v12 = vld [vmem:[%s1477_s1 + $0x178] sm:$0xff]  }
  0x18   :  { %1027 = vmatpush3.bf16.msra.mxu0 %v1150_v22  ;;  %v1187_v11 = vld [vmem:[%s1477_s1 + $0x1b0] sm:$0xff]   ;;  %v1189_v13 = vld [vmem:[%s1477_s1 + $0x1f8] sm:$0xff]  }
  0x19   :  { %1055 = vmatpush3.bf16.msra.mxu1 %v1151_v23  ;;  %1028 = vmatprep.subr.bf16.mxu0 %v1152_v24  ;;  %v1190_v14 = vld [vmem:[%s1477_s1 + $0x138] sm:$0xff]   ;;  %v32_v16 = vld [vmem:[%s1478_s0 + $0x10] sm:$0xff] }
  0x1a   :  { %1056 = vmatprep.subr.bf16.mxu1 %v1153_v25  ;;  %v1191_v15 = vld [vmem:[%s1477_s1 + $0x1b8] sm:$0xff]   ;;  %v36_v17 = vld [vmem:[%s1478_s0 + $0x30] sm:$0xff] }
  0x1b   :  { %v33_v18 = vld [vmem:[%s1478_s0 + $0x18] sm:$0xff]  ;;  %v920_v20 = vcombine.low %v32_v16, %v36_v17  ;;  %v921_v21 = vcombine.high %v32_v16, %v36_v17  ;;  %v40_v24 = vld [vmem:[%s1478_s0 + $0x50] sm:$0xff] }
  0x1c   :  { %1029 = vmatpush3.bf16.msra.mxu0 %v1154_v26  ;;  %v37_v19 = vld [vmem:[%s1478_s0 + $0x38] sm:$0xff]  ;;  %v44_v25 = vld [vmem:[%s1478_s0 + $0x70] sm:$0xff] }
  0x1d   :  { %1057 = vmatpush3.bf16.msra.mxu1 %v1155_v27  ;;  %1030 = vmatprep.subr.bf16.mxu0 %v1156_v28  ;;  %v922_v22 = vcombine.low %v33_v18, %v37_v19  ;;  %v923_v23 = vcombine.high %v33_v18, %v37_v19  ;;  %v41_v26 = vld [vmem:[%s1478_s0 + $0x58] sm:$0xff]  ;;  %v929_v27 = vcombine.high %v40_v24, %v44_v25 }
  0x1e   :  { %1058 = vmatprep.subr.bf16.mxu1 %v1157_v29  ;;  %v45_v28 = vld [vmem:[%s1478_s0 + $0x78] sm:$0xff] }
  0x1f   :  { %v931_v29 = vcombine.high %v41_v26, %v45_v28 }
  0x20   :  { %1031 = vmatpush3.bf16.msra.mxu0 %v1158_v30  ;;  %v928_v30 = vcombine.low %v40_v24, %v44_v25 }
  0x21   :  { %1059 = vmatpush3.bf16.msra.mxu1 %v1159_v31  ;;  %1072 = vmatprep.subr.bf16.mxu0 %v1160_v40  ;;  %v930_v31 = vcombine.low %v41_v26, %v45_v28 }
  0x22   :  { %1100 = vmatprep.subr.bf16.mxu1 %v1161_v41 }
  0x23   :  { %671 = vmatmul.mubr.bf16.vlgmr.msra.gmra.mrb[0].mxu0 %v916_v35 }
  0x24   :  { %720 = vmatmul.mubr.bf16.vlgmr.msra.gmra.mrb[0].mxu1 %v918_v38  ;;  %1073 = vmatpush3.bf16.msra.mxu0 %v1162_v42 }
  0x25   :  { %1101 = vmatpush3.bf16.msra.mxu1 %v1163_v43  ;;  %1074 = vmatprep.subr.bf16.mxu0 %v1164_v44 }
  0x26   :  { %1102 = vmatprep.subr.bf16.mxu1 %v1165_v45  ;;  %678 = vmatprep.mubr.bf16.mxu0 %v925_v62 }
  0x27   :  { %727 = vmatprep.mubr.bf16.mxu1 %v927_v2 }
  0x28   :  { %1075 = vmatpush3.bf16.msra.mxu0 %v1166_v46 }
  0x29   :  { %1103 = vmatpush3.bf16.msra.mxu1 %v1167_v47  ;;  %1076 = vmatprep.subr.bf16.mxu0 %v1168_v48 }
  0x2a   :  { %1104 = vmatprep.subr.bf16.mxu1 %v1169_v49 }
  0x2b   :  { %679 = vmatmul.mubr.bf16.gmra.mrb[4].mxu0 %v924_v1 }
  0x2c   :  { %1077 = vmatpush3.bf16.msra.mxu0 %v1170_v50  ;;  %728 = vmatmul.mubr.bf16.gmra.mrb[4].mxu1 %v926_v4 }
  0x2d   :  { %1105 = vmatpush3.bf16.msra.mxu1 %v1171_v51  ;;  %1078 = vmatprep.subr.bf16.mxu0 %v1172_v52 }
  0x2e   :  { %1106 = vmatprep.subr.bf16.mxu1 %v1173_v53  ;;  %768 = vmatprep.mubr.bf16.mxu0 %v921_v21 }
  0x2f   :  { %817 = vmatprep.mubr.bf16.mxu1 %v923_v23 }
  0x30   :  { %1079 = vmatpush3.bf16.msra.mxu0 %v1174_v54 }
  0x31   :  { %1107 = vmatpush3.bf16.msra.mxu1 %v1175_v55  ;;  %1080 = vmatprep.subr.bf16.mxu0 %v1176_v56 }
  0x32   :  { %1108 = vmatprep.subr.bf16.mxu1 %v1177_v57 }
  0x34   :  { %1081 = vmatpush3.bf16.msra.mxu0 %v1178_v58 }
  0x35   :  { %1109 = vmatpush3.bf16.msra.mxu1 %v1179_v59  ;;  %1082 = vmatprep.subr.bf16.mxu0 %v1180_v3 }
  0x36   :  { %1110 = vmatprep.subr.bf16.mxu1 %v1181_v5 }
  0x38   :  { %1083 = vmatpush3.bf16.msra.mxu0 %v1182_v6 }
  0x39   :  { %1111 = vmatpush3.bf16.msra.mxu1 %v1183_v7  ;;  %1084 = vmatprep.subr.bf16.mxu0 %v1184_v8 }
  0x3a   :  { %1112 = vmatprep.subr.bf16.mxu1 %v1185_v9  ;;  %v996_v9 = vld [vmem:[%s1479_s2] ss:$0 sm:$0xff] }
  0x3c   :  { %1085 = vmatpush3.bf16.msra.mxu0 %v1186_v10 }
  0x3d   :  { %1113 = vmatpush3.bf16.msra.mxu1 %v1187_v11  ;;  %1086 = vmatprep.subr.bf16.mxu0 %v1188_v12 }
  0x3e   :  { %1114 = vmatprep.subr.bf16.mxu1 %v1189_v13 }
  0x40   :  { %1087 = vmatpush3.bf16.msra.mxu0 %v1190_v14 }
  0x41   :  { %1115 = vmatpush3.bf16.msra.mxu1 %v1191_v15 }
  0x43   :  { %769 = vmatmul.mubr.bf16.vlgmr.msra.gmra.mrb[8].mxu0 %v920_v20 }
  0x44   :  { %818 = vmatmul.mubr.bf16.vlgmr.msra.gmra.mrb[8].mxu1 %v922_v22  ;;  %776 = vmatprep.mubr.bf16.mxu0 %v929_v27 }
  0x45   :  { %825 = vmatprep.mubr.bf16.mxu1 %v931_v29 }
  0x4b   :  { %777 = vmatmul.mubr.bf16.gmra.mrb[12].mxu0 %v928_v30 }
  0x4c   :  { %826 = vmatmul.mubr.bf16.gmra.mrb[12].mxu1 %v930_v31 }
  0xf6   :  { %v1032_v32 = vpop.f32.mrb[0].mxu0 }
  0xf7   :  { %v1060_v33 = vpop.f32.mrb[0].mxu1  ;;  %v1033_v34 = vpop.f32.mrb[1].mxu0 }
  0xf8   :  { %v1034_v35 = vadd.f32 %v1033_v34, %v1032_v32  ;;  %v1061_v36 = vpop.f32.mrb[1].mxu1  ;;  %v1035_v37 = vpop.f32.mrb[2].mxu0 }
  0xf9   :  { %v1062_v38 = vadd.f32 %v1061_v36, %v1060_v33  ;;  %v1063_v39 = vpop.f32.mrb[2].mxu1  ;;  %v1036_v40 = vpop.f32.mrb[3].mxu0 }
  0xfa   :  { %v1037_v41 = vadd.f32 %v1036_v40, %v1035_v37  ;;  %v1064_v42 = vpop.f32.mrb[3].mxu1 }
  0xfb   :  { %v722_v43 = vadd.f32 %v1062_v38, %v1034_v35  ;;  %v1065_v44 = vadd.f32 %v1064_v42, %v1063_v39 }
  0xfd   :  { %v725_v45 = vadd.f32 %v1065_v44, %v1037_v41 }
  0xfe   :  { %v1038_v46 = vpop.f32.mrb[4].mxu0 }
  0xff   :  { %v1066_v47 = vpop.f32.mrb[4].mxu1  ;;  %v1039_v48 = vpop.f32.mrb[5].mxu0 }
 0x100   :  { %v1040_v49 = vadd.f32 %v1039_v48, %v1038_v46  ;;  %v1067_v50 = vpop.f32.mrb[5].mxu1  ;;  %v1041_v51 = vpop.f32.mrb[6].mxu0 }
 0x101   :  { %v1068_v52 = vadd.f32 %v1067_v50, %v1066_v47  ;;  %v1069_v53 = vpop.f32.mrb[6].mxu1  ;;  %v1042_v54 = vpop.f32.mrb[7].mxu0 }
 0x102   :  { %v1043_v55 = vadd.f32 %v1042_v54, %v1041_v51  ;;  %v1070_v56 = vpop.f32.mrb[7].mxu1 }
 0x103   :  { %v730_v57 = vadd.f32 %v1068_v52, %v1040_v49  ;;  %v1071_v58 = vadd.f32 %v1070_v56, %v1069_v53 }
 0x105   :  { %v733_v59 = vadd.f32 %v1071_v58, %v1043_v55 }
 0x116   :  { %v1088_v60 = vpop.f32.mrb[8].mxu0 }
 0x117   :  { %v1116_v61 = vpop.f32.mrb[8].mxu1  ;;  %v1089_v62 = vpop.f32.mrb[9].mxu0 }
 0x118   :  { %v1117_v63 = vpop.f32.mrb[9].mxu1  ;;  %v1090_v0 = vadd.f32 %v1089_v62, %v1088_v60  ;;  %v1091_v2 = vpop.f32.mrb[10].mxu0 }
 0x119   :  { %v1118_v1 = vadd.f32 %v1117_v63, %v1116_v61  ;;  %v1119_v3 = vpop.f32.mrb[10].mxu1  ;;  %v1092_v4 = vpop.f32.mrb[11].mxu0 }
 0x11a   :  { %v1120_v5 = vpop.f32.mrb[11].mxu1  ;;  %v771_v6 = vadd.f32 %v1090_v0, %v722_v43  ;;  %v1093_v7 = vadd.f32 %v1092_v4, %v1091_v2 }
 0x11b   :  { %v1121_v8 = vadd.f32 %v1120_v5, %v1119_v3 }
 0x11c   :  { %v820_v10 = vadd.f32 %v1118_v1, %v771_v6  ;;  %v774_v11 = vadd.f32 %v1093_v7, %v725_v45 }
 0x11e   :  { %v856_v12 = vadd.f32 %v996_v9, %v820_v10  ;;  %v823_v13 = vadd.f32 %v1121_v8, %v774_v11  ;;  %v1094_v14 = vpop.f32.mrb[12].mxu0 }
 0x11f   :  { %v1122_v15 = vpop.f32.mrb[12].mxu1  ;;  %v1095_v16 = vpop.f32.mrb[13].mxu0 }
 0x120   :  { %v1123_v17 = vpop.f32.mrb[13].mxu1  ;;  %v857_v18 = vadd.f32 %v996_v9, %v823_v13  ;;  %v1096_v19 = vadd.f32 %v1095_v16, %v1094_v14  ;;  %v1097_v21 = vpop.f32.mrb[14].mxu0  ;;  %v890_v23 = vmul.f32 %v856_v12, %v856_v12 }
 0x121   :  { %v1124_v20 = vadd.f32 %v1123_v17, %v1122_v15  ;;  %v1125_v22 = vpop.f32.mrb[14].mxu1  ;;  %v1098_v24 = vpop.f32.mrb[15].mxu0 }
 0x122   :  { %v1126_v25 = vpop.f32.mrb[15].mxu1  ;;  %v1008_v26 = vpack.c.bf16 %v857_v18, %v856_v12  ;;  %v880_v27 = vadd.f32 %v857_v18, %v856_v12  ;;  %v891_v28 = vmul.f32 %v857_v18, %v857_v18  ;;  %v779_v29 = vadd.f32 %v1096_v19, %v730_v57 }
 0x123   :  { %v1099_v30 = vadd.f32 %v1098_v24, %v1097_v21  ;;  %v1127_v31 = vadd.f32 %v1126_v25, %v1125_v22 }
 0x124   :  { %1009 = vst [vmem:[%s1480_s3] sm:$0xff] %v1008_v26   ;;  %v894_v32 = vadd.f32 %v891_v28, %v890_v23  ;;  %v828_v33 = vadd.f32 %v1124_v20, %v779_v29 }
 0x125   :  { %v782_v34 = vadd.f32 %v1099_v30, %v733_v59 }
 0x126   :  { %v858_v35 = vadd.f32 %v996_v9, %v828_v33 }
 0x127   :  { %v831_v36 = vadd.f32 %v1127_v31, %v782_v34 }
 0x128   :  { %v881_v37 = vadd.f32 %v880_v27, %v858_v35  ;;  %v892_v38 = vmul.f32 %v858_v35, %v858_v35 }
 0x129   :  { %v859_v39 = vadd.f32 %v996_v9, %v831_v36 }
 0x12a   :  { %v895_v40 = vadd.f32 %v894_v32, %v892_v38 }
 0x12b   :  { %v1013_v41 = vpack.c.bf16 %v859_v39, %v858_v35  ;;  %v882_v42 = vadd.f32 %v881_v37, %v859_v39  ;;  %v893_v43 = vmul.f32 %v859_v39, %v859_v39 }
 0x12d   :  { %1015 = vst [vmem:[%s1480_s3 + $0x8] sm:$0xff] %v1013_v41   ;;  %v883_v44 = vrot.slane %v882_v42, 4  ;;  %v896_v45 = vadd.f32 %v895_v40, %v893_v43 }
 0x12f   :  { %v884_v46 = vadd.f32 %v883_v44, %v882_v42  ;;  %v897_v47 = vrot.slane %v896_v45, 4 }
 0x131   :  { %v885_v48 = vrot.slane %v884_v46, 2  ;;  %v898_v49 = vadd.f32 %v897_v47, %v896_v45 }
 0x133   :  { %v886_v50 = vadd.f32 %v885_v48, %v884_v46  ;;  %v899_v51 = vrot.slane %v898_v49, 2 }
 0x135   :  { %v887_v52 = vrot.slane %v886_v50, 1  ;;  %v900_v53 = vadd.f32 %v899_v51, %v898_v49 }
 0x137   :  { %v888_v54 = vadd.f32 %v887_v52, %v886_v50  ;;  %v901_v55 = vrot.slane %v900_v53, 1 }
 0x139   :  { %889 = vst [vmem:[%s1481_s4] sm:$0x1] %v888_v54  ;;  %v902_v56 = vadd.f32 %v901_v55, %v900_v53 }
 0x13b   :  { %903 = vst [vmem:[%s1482_s5] sm:$0x1] %v902_v56 }

// kernel: _lambda_.9
= control target key start
LH: loop header
LB: loop body
LE: loop exit
PB: predicated region body
PF: predicated region fallthrough
CT: control target
= control target key end

     0   :  { %s1255_s1 = inlined_call_operand.vmem [shape: bf16[1024,128], index: 1, kind: input, shape index: {}]   ;;  %s1256_s0 = inlined_call_operand.vmem [shape: bf16[16,1024], index: 0, kind: input, shape index: {}]   ;;  %s1257_s2 = inlined_call_operand.vmem [shape: f32[1,128], index: 2, kind: input, shape index: {}]   ;;  %s1258_s3 = inlined_call_operand.vmem [shape: bf16[16,128], index: 3, kind: output, shape index: {}]  }
   0x1   :  { %v949_v0 = vld [vmem:[%s1255_s1 + $0x40] sm:$0xff]   ;;  %v953_v4 = vld [vmem:[%s1255_s1 + $0x48] sm:$0xff]   ;;  %v957_v8 = vld [vmem:[%s1255_s1 + $0x50] sm:$0xff]  }
   0x2   :  { %v950_v1 = vld [vmem:[%s1255_s1 + $0xc0] sm:$0xff]   ;;  %861 = vmatprep.subr.bf16.mxu0 %v949_v0  ;;  %v954_v5 = vld [vmem:[%s1255_s1 + $0xc8] sm:$0xff]   ;;  %v958_v9 = vld [vmem:[%s1255_s1 + $0xd0] sm:$0xff]  }
   0x3   :  { %v951_v2 = vld [vmem:[%s1255_s1] sm:$0xff]   ;;  %883 = vmatprep.subr.bf16.mxu1 %v950_v1  ;;  %v955_v6 = vld [vmem:[%s1255_s1 + $0x8] sm:$0xff]   ;;  %v959_v10 = vld [vmem:[%s1255_s1 + $0x10] sm:$0xff]  }
   0x4   :  { %v952_v3 = vld [vmem:[%s1255_s1 + $0x80] sm:$0xff]   ;;  %862 = vmatpush3.bf16.msra.mxu0 %v951_v2  ;;  %v956_v7 = vld [vmem:[%s1255_s1 + $0x88] sm:$0xff]   ;;  %v960_v11 = vld [vmem:[%s1255_s1 + $0x90] sm:$0xff]  }
   0x5   :  { %884 = vmatpush3.bf16.msra.mxu1 %v952_v3  ;;  %863 = vmatprep.subr.bf16.mxu0 %v953_v4  ;;  %v961_v12 = vld [vmem:[%s1255_s1 + $0x58] sm:$0xff]   ;;  %v965_v16 = vld [vmem:[%s1255_s1 + $0x60] sm:$0xff]   ;;  %v969_v20 = vld [vmem:[%s1255_s1 + $0x68] sm:$0xff]  }
   0x6   :  { %885 = vmatprep.subr.bf16.mxu1 %v954_v5  ;;  %v962_v13 = vld [vmem:[%s1255_s1 + $0xd8] sm:$0xff]   ;;  %v966_v17 = vld [vmem:[%s1255_s1 + $0xe0] sm:$0xff]   ;;  %v970_v21 = vld [vmem:[%s1255_s1 + $0xe8] sm:$0xff]  }
   0x7   :  { %v963_v14 = vld [vmem:[%s1255_s1 + $0x18] sm:$0xff]   ;;  %v967_v18 = vld [vmem:[%s1255_s1 + $0x20] sm:$0xff]   ;;  %v971_v22 = vld [vmem:[%s1255_s1 + $0x28] sm:$0xff]  }
   0x8   :  { %864 = vmatpush3.bf16.msra.mxu0 %v955_v6  ;;  %v964_v15 = vld [vmem:[%s1255_s1 + $0x98] sm:$0xff]   ;;  %v968_v19 = vld [vmem:[%s1255_s1 + $0xa0] sm:$0xff]   ;;  %v972_v23 = vld [vmem:[%s1255_s1 + $0xa8] sm:$0xff]  }
   0x9   :  { %886 = vmatpush3.bf16.msra.mxu1 %v956_v7  ;;  %865 = vmatprep.subr.bf16.mxu0 %v957_v8  ;;  %v973_v24 = vld [vmem:[%s1255_s1 + $0x70] sm:$0xff]   ;;  %v977_v28 = vld [vmem:[%s1255_s1 + $0x78] sm:$0xff]   ;;  %v23_v32 = vld [vmem:[%s1256_s0] sm:$0xff] }
   0xa   :  { %887 = vmatprep.subr.bf16.mxu1 %v958_v9  ;;  %v974_v25 = vld [vmem:[%s1255_s1 + $0xf0] sm:$0xff]   ;;  %v978_v29 = vld [vmem:[%s1255_s1 + $0xf8] sm:$0xff]   ;;  %v27_v33 = vld [vmem:[%s1256_s0 + $0x20] sm:$0xff] }
   0xb   :  { %v975_v26 = vld [vmem:[%s1255_s1 + $0x30] sm:$0xff]   ;;  %v979_v30 = vld [vmem:[%s1255_s1 + $0x38] sm:$0xff]   ;;  %v24_v34 = vld [vmem:[%s1256_s0 + $0x8] sm:$0xff]  ;;  %v779_v35 = vcombine.low %v23_v32, %v27_v33  ;;  %v780_v36 = vcombine.high %v23_v32, %v27_v33 }
   0xc   :  { %866 = vmatpush3.bf16.msra.mxu0 %v959_v10  ;;  %v976_v27 = vld [vmem:[%s1255_s1 + $0xb0] sm:$0xff]   ;;  %v980_v31 = vld [vmem:[%s1255_s1 + $0xb8] sm:$0xff]   ;;  %v28_v37 = vld [vmem:[%s1256_s0 + $0x28] sm:$0xff] }
   0xd   :  { %888 = vmatpush3.bf16.msra.mxu1 %v960_v11  ;;  %867 = vmatprep.subr.bf16.mxu0 %v961_v12  ;;  %v781_v38 = vcombine.low %v24_v34, %v28_v37  ;;  %v782_v39 = vcombine.high %v24_v34, %v28_v37  ;;  %v981_v40 = vld [vmem:[%s1255_s1 + $0x140] sm:$0xff]   ;;  %v985_v44 = vld [vmem:[%s1255_s1 + $0x148] sm:$0xff]   ;;  %v989_v48 = vld [vmem:[%s1255_s1 + $0x150] sm:$0xff]  }
   0xe   :  { %889 = vmatprep.subr.bf16.mxu1 %v962_v13  ;;  %615 = vmatprep.mubr.bf16.mxu0 %v780_v36  ;;  %v982_v41 = vld [vmem:[%s1255_s1 + $0x1c0] sm:$0xff]   ;;  %v986_v45 = vld [vmem:[%s1255_s1 + $0x1c8] sm:$0xff]   ;;  %v990_v49 = vld [vmem:[%s1255_s1 + $0x1d0] sm:$0xff]  }
   0xf   :  { %656 = vmatprep.mubr.bf16.mxu1 %v782_v39  ;;  %v983_v42 = vld [vmem:[%s1255_s1 + $0x100] sm:$0xff]   ;;  %v987_v46 = vld [vmem:[%s1255_s1 + $0x108] sm:$0xff]   ;;  %v991_v50 = vld [vmem:[%s1255_s1 + $0x110] sm:$0xff]  }
  0x10   :  { %868 = vmatpush3.bf16.msra.mxu0 %v963_v14  ;;  %v984_v43 = vld [vmem:[%s1255_s1 + $0x180] sm:$0xff]   ;;  %v988_v47 = vld [vmem:[%s1255_s1 + $0x188] sm:$0xff]   ;;  %v992_v51 = vld [vmem:[%s1255_s1 + $0x190] sm:$0xff]  }
  0x11   :  { %890 = vmatpush3.bf16.msra.mxu1 %v964_v15  ;;  %869 = vmatprep.subr.bf16.mxu0 %v965_v16  ;;  %v993_v52 = vld [vmem:[%s1255_s1 + $0x158] sm:$0xff]   ;;  %v997_v56 = vld [vmem:[%s1255_s1 + $0x160] sm:$0xff]   ;;  %v1001_v60 = vld [vmem:[%s1255_s1 + $0x168] sm:$0xff]  }
  0x12   :  { %891 = vmatprep.subr.bf16.mxu1 %v966_v17  ;;  %v994_v53 = vld [vmem:[%s1255_s1 + $0x1d8] sm:$0xff]   ;;  %v998_v57 = vld [vmem:[%s1255_s1 + $0x1e0] sm:$0xff]   ;;  %v1002_v61 = vld [vmem:[%s1255_s1 + $0x1e8] sm:$0xff]  }
  0x13   :  { %v995_v54 = vld [vmem:[%s1255_s1 + $0x118] sm:$0xff]   ;;  %v999_v58 = vld [vmem:[%s1255_s1 + $0x120] sm:$0xff]   ;;  %v1003_v62 = vld [vmem:[%s1255_s1 + $0x128] sm:$0xff]  }
  0x14   :  { %870 = vmatpush3.bf16.msra.mxu0 %v967_v18  ;;  %v996_v55 = vld [vmem:[%s1255_s1 + $0x198] sm:$0xff]   ;;  %v1000_v59 = vld [vmem:[%s1255_s1 + $0x1a0] sm:$0xff]   ;;  %v1004_v63 = vld [vmem:[%s1255_s1 + $0x1a8] sm:$0xff]  }
  0x15   :  { %892 = vmatpush3.bf16.msra.mxu1 %v968_v19  ;;  %871 = vmatprep.subr.bf16.mxu0 %v969_v20  ;;  %v1005_v0 = vld [vmem:[%s1255_s1 + $0x170] sm:$0xff]   ;;  %v1009_v4 = vld [vmem:[%s1255_s1 + $0x178] sm:$0xff]  }
  0x16   :  { %893 = vmatprep.subr.bf16.mxu1 %v970_v21  ;;  %v1006_v1 = vld [vmem:[%s1255_s1 + $0x1f0] sm:$0xff]   ;;  %v1010_v5 = vld [vmem:[%s1255_s1 + $0x1f8] sm:$0xff]  }
  0x17   :  { %v1007_v2 = vld [vmem:[%s1255_s1 + $0x130] sm:$0xff]   ;;  %v1011_v6 = vld [vmem:[%s1255_s1 + $0x138] sm:$0xff]  }
  0x18   :  { %872 = vmatpush3.bf16.msra.mxu0 %v971_v22  ;;  %v1008_v3 = vld [vmem:[%s1255_s1 + $0x1b0] sm:$0xff]   ;;  %v1012_v7 = vld [vmem:[%s1255_s1 + $0x1b8] sm:$0xff]  }
  0x19   :  { %894 = vmatpush3.bf16.msra.mxu1 %v972_v23  ;;  %873 = vmatprep.subr.bf16.mxu0 %v973_v24  ;;  %v25_v8 = vld [vmem:[%s1256_s0 + $0x10] sm:$0xff]  ;;  %v26_v12 = vld [vmem:[%s1256_s0 + $0x18] sm:$0xff] }
  0x1a   :  { %895 = vmatprep.subr.bf16.mxu1 %v974_v25  ;;  %v29_v9 = vld [vmem:[%s1256_s0 + $0x30] sm:$0xff]  ;;  %v30_v13 = vld [vmem:[%s1256_s0 + $0x38] sm:$0xff] }
  0x1b   :  { %v783_v10 = vcombine.low %v25_v8, %v29_v9  ;;  %v784_v11 = vcombine.high %v25_v8, %v29_v9  ;;  %v785_v14 = vcombine.low %v26_v12, %v30_v13  ;;  %v786_v15 = vcombine.high %v26_v12, %v30_v13 }
  0x1c   :  { %874 = vmatpush3.bf16.msra.mxu0 %v975_v26 }
  0x1d   :  { %896 = vmatpush3.bf16.msra.mxu1 %v976_v27  ;;  %875 = vmatprep.subr.bf16.mxu0 %v977_v28 }
  0x1e   :  { %897 = vmatprep.subr.bf16.mxu1 %v978_v29 }
  0x20   :  { %876 = vmatpush3.bf16.msra.mxu0 %v979_v30 }
  0x21   :  { %898 = vmatpush3.bf16.msra.mxu1 %v980_v31  ;;  %905 = vmatprep.subr.bf16.mxu0 %v981_v40 }
  0x22   :  { %927 = vmatprep.subr.bf16.mxu1 %v982_v41 }
  0x23   :  { %616 = vmatmul.mubr.bf16.vlgmr.msra.gmra.mrb[0].mxu0 %v779_v35 }
  0x24   :  { %657 = vmatmul.mubr.bf16.vlgmr.msra.gmra.mrb[0].mxu1 %v781_v38  ;;  %906 = vmatpush3.bf16.msra.mxu0 %v983_v42 }
  0x25   :  { %928 = vmatpush3.bf16.msra.mxu1 %v984_v43  ;;  %907 = vmatprep.subr.bf16.mxu0 %v985_v44 }
  0x26   :  { %929 = vmatprep.subr.bf16.mxu1 %v986_v45  ;;  %697 = vmatprep.mubr.bf16.mxu0 %v784_v11  ;;  %v851_v45 = vld [vmem:[%s1257_s2] ss:$0 sm:$0xff] }
  0x27   :  { %738 = vmatprep.mubr.bf16.mxu1 %v786_v15 }
  0x28   :  { %908 = vmatpush3.bf16.msra.mxu0 %v987_v46 }
  0x29   :  { %930 = vmatpush3.bf16.msra.mxu1 %v988_v47  ;;  %909 = vmatprep.subr.bf16.mxu0 %v989_v48 }
  0x2a   :  { %931 = vmatprep.subr.bf16.mxu1 %v990_v49 }
  0x2c   :  { %910 = vmatpush3.bf16.msra.mxu0 %v991_v50 }
  0x2d   :  { %932 = vmatpush3.bf16.msra.mxu1 %v992_v51  ;;  %911 = vmatprep.subr.bf16.mxu0 %v993_v52 }
  0x2e   :  { %933 = vmatprep.subr.bf16.mxu1 %v994_v53 }
  0x30   :  { %912 = vmatpush3.bf16.msra.mxu0 %v995_v54 }
  0x31   :  { %934 = vmatpush3.bf16.msra.mxu1 %v996_v55  ;;  %913 = vmatprep.subr.bf16.mxu0 %v997_v56 }
  0x32   :  { %935 = vmatprep.subr.bf16.mxu1 %v998_v57 }
  0x34   :  { %914 = vmatpush3.bf16.msra.mxu0 %v999_v58 }
  0x35   :  { %936 = vmatpush3.bf16.msra.mxu1 %v1000_v59  ;;  %915 = vmatprep.subr.bf16.mxu0 %v1001_v60 }
  0x36   :  { %937 = vmatprep.subr.bf16.mxu1 %v1002_v61 }
  0x38   :  { %916 = vmatpush3.bf16.msra.mxu0 %v1003_v62 }
  0x39   :  { %938 = vmatpush3.bf16.msra.mxu1 %v1004_v63  ;;  %917 = vmatprep.subr.bf16.mxu0 %v1005_v0 }
  0x3a   :  { %939 = vmatprep.subr.bf16.mxu1 %v1006_v1 }
  0x3c   :  { %918 = vmatpush3.bf16.msra.mxu0 %v1007_v2 }
  0x3d   :  { %940 = vmatpush3.bf16.msra.mxu1 %v1008_v3  ;;  %919 = vmatprep.subr.bf16.mxu0 %v1009_v4 }
  0x3e   :  { %941 = vmatprep.subr.bf16.mxu1 %v1010_v5 }
  0x40   :  { %920 = vmatpush3.bf16.msra.mxu0 %v1011_v6 }
  0x41   :  { %942 = vmatpush3.bf16.msra.mxu1 %v1012_v7 }
  0x43   :  { %698 = vmatmul.mubr.bf16.vlgmr.msra.gmra.mrb[4].mxu0 %v783_v10 }
  0x44   :  { %739 = vmatmul.mubr.bf16.vlgmr.msra.gmra.mrb[4].mxu1 %v785_v14 }
  0xf6   :  { %v877_v16 = vpop.f32.mrb[0].mxu0 }
  0xf7   :  { %v899_v17 = vpop.f32.mrb[0].mxu1  ;;  %v878_v18 = vpop.f32.mrb[1].mxu0 }
  0xf8   :  { %v879_v19 = vadd.f32 %v878_v18, %v877_v16  ;;  %v900_v20 = vpop.f32.mrb[1].mxu1  ;;  %v880_v21 = vpop.f32.mrb[2].mxu0 }
  0xf9   :  { %v901_v22 = vadd.f32 %v900_v20, %v899_v17  ;;  %v902_v23 = vpop.f32.mrb[2].mxu1  ;;  %v881_v24 = vpop.f32.mrb[3].mxu0 }
  0xfa   :  { %v882_v25 = vadd.f32 %v881_v24, %v880_v21  ;;  %v903_v26 = vpop.f32.mrb[3].mxu1 }
  0xfb   :  { %v659_v27 = vadd.f32 %v901_v22, %v879_v19  ;;  %v904_v28 = vadd.f32 %v903_v26, %v902_v23 }
  0xfd   :  { %v662_v29 = vadd.f32 %v904_v28, %v882_v25 }
 0x116   :  { %v921_v30 = vpop.f32.mrb[4].mxu0 }
 0x117   :  { %v943_v31 = vpop.f32.mrb[4].mxu1  ;;  %v922_v32 = vpop.f32.mrb[5].mxu0 }
 0x118   :  { %v923_v33 = vadd.f32 %v922_v32, %v921_v30  ;;  %v944_v34 = vpop.f32.mrb[5].mxu1  ;;  %v924_v35 = vpop.f32.mrb[6].mxu0 }
 0x119   :  { %v945_v36 = vadd.f32 %v944_v34, %v943_v31  ;;  %v946_v37 = vpop.f32.mrb[6].mxu1  ;;  %v925_v38 = vpop.f32.mrb[7].mxu0 }
 0x11a   :  { %v700_v39 = vadd.f32 %v923_v33, %v659_v27  ;;  %v926_v40 = vadd.f32 %v925_v38, %v924_v35  ;;  %v947_v41 = vpop.f32.mrb[7].mxu1 }
 0x11b   :  { %v948_v42 = vadd.f32 %v947_v41, %v946_v37 }
 0x11c   :  { %v741_v43 = vadd.f32 %v945_v36, %v700_v39  ;;  %v703_v44 = vadd.f32 %v926_v40, %v662_v29 }
 0x11e   :  { %v744_v46 = vadd.f32 %v948_v42, %v703_v44  ;;  %v763_v47 = vadd.f32 %v851_v45, %v741_v43 }
 0x120   :  { %v764_v48 = vadd.f32 %v851_v45, %v744_v46 }
 0x122   :  { %v859_v49 = vpack.c.bf16 %v764_v48, %v763_v47 }
 0x124   :  { %860 = vst [vmem:[%s1258_s3] sm:$0xff] %v859_v49  }

</bundles_post_ra>
